<compile_context>
chip_gen: v7x
topology: tpu7x:2x2x1
jax: 0.10.0
libtpu: 0.0.40
codegen_flags: <defaults>
</compile_context>

<pallas_src>
import jax
import jax.numpy as jnp
from jax.experimental import pallas as pl
from jax.experimental.pallas import tpu as pltpu


def _cdiv(a, b):
    return (a + b - 1) // b


def _round_up(a, b):
    return _cdiv(a, b) * b


# ----------------------------------------------------------------------------
# In-kernel math helpers
# ----------------------------------------------------------------------------

def _erf(x):
    # TODO(synk): Mosaic has no exact erf primitive; Abramowitz & Stegun 7.1.26
    #             (|err| <= 1.5e-7) stands in for nn.GELU()'s exact erf.
    a1, a2, a3, a4, a5 = 0.254829592, -0.284496736, 1.421413741, -1.453152027, 1.061405429
    p = 0.3275911
    ax = jnp.abs(x)
    d = 1.0 + p * ax
    # EUP reciprocal + one Newton step: keeps the divide off the VALU, ~f32 exact.
    t0 = pl.reciprocal(d, approx=True)
    t = t0 * (2.0 - d * t0)
    poly = ((((a5 * t + a4) * t + a3) * t + a2) * t + a1) * t
    y = 1.0 - poly * jnp.exp(-ax * ax)          # exp also lives on the EUP slot
    return jnp.where(x >= 0, y, -y)


def _gelu(x):
    # GELU math stays f32 (v5e has no bf16 VPU/EUP).
    return 0.5 * x * (1.0 + _erf(x * 0.7071067811865476))


# ----------------------------------------------------------------------------
# Fused MLP kernel:  y = GELU(x @ W1 + b1) @ W2 + b2   (dropout p=0 -> identity)
# ----------------------------------------------------------------------------

def _mlp_kernel(x_ref, w1_ref, b1_ref, w2_ref, b2_ref, o_ref):
    # MXU-native operand dtypes (bf16 stays bf16); f32 accumulation.
    h = jnp.dot(x_ref[...], w1_ref[...], preferred_element_type=jnp.float32)
    h = _gelu(h + b1_ref[...])                  # f32 elementwise
    h = h.astype(w2_ref.dtype)                  # back to MXU-native dtype
    y = jnp.dot(h, w2_ref[...], preferred_element_type=jnp.float32) + b2_ref[...]
    o_ref[...] = y.astype(o_ref.dtype)


def mlp_forward(x, w1, b1, w2, b2, *, drop_rate=0.0, block_m=4096):
    """PyTorch `Mlp.forward` equivalent.

    x: (..., in_features); w1: (in_features, hidden); b1: (hidden,)
    w2: (hidden, out_features); b2: (out_features,)
    """
    # TODO(synk): stochastic dropout (drop_rate > 0) not implemented; the module
    #             defaults to p=0.0 (identity), which is what is computed here.
    assert drop_rate == 0.0

    Cin = x.shape[-1]
    Hd = w1.shape[1]
    Cout = w2.shape[1]
    lead_shape = x.shape[:-1]

    x2d = x.reshape(-1, Cin)
    M = x2d.shape[0]

    # --- lane-dense packing: fold `pack` rows per kernel row so the kernel's
    #     input/output last dims are multiples of 128 (unmasked vld/vst). Done
    #     by feeding block-diagonal weights -> zero in-kernel relayout.
    pack = 1
    if Cout < 128 and 128 % Cout == 0:
        cand = 128 // Cout
        # block-diag weights cost `cand`x the weight VMEM; keep that bounded.
        if cand * cand * (Cin * Hd + Hd * Cout) * 4 <= (8 << 20):
            pack = cand
    pCin, pHd, pCout = pack * Cin, pack * Hd, pack * Cout

    # --- per-generation VMEM budget -----------------------------------------
    try:
        vmem_cap = int(pltpu.get_tpu_info().vmem_capacity_bytes)
    except Exception:                    # pragma: no cover
        vmem_cap = 64 << 20              # conservative (v7x per-TensorCore)
    budget = int(0.55 * vmem_cap)

    # Resident weights are still double-buffered by the pipeline -> account 2x.
    weight_bytes = 2 * 4 * (pCin * pHd + pHd * pCout + pHd + pCout)

    def _fits(tm):
        io = 2 * 4 * tm * (pCin + pCout)        # double-buffered x / out tiles
        temps = 4 * 4 * tm * pHd                # f32 hidden + GELU temporaries
        return weight_bytes + io + temps <= budget

    rows_needed = _cdiv(M, pack)                # packed rows that cover M
    block_rows = max(8, block_m // pack)

    tm = min(_round_up(rows_needed, 8), _round_up(block_rows, 8))
    while tm > 8 and not _fits(tm):
        tm = max(8, _round_up(tm // 2, 8))

    # Enough grid steps for v7x's two TensorCores when there is enough work.
    min_steps = max(1, min(4, rows_needed // 256))
    grid_n = max(_cdiv(rows_needed, tm), min_steps)
    grid_n = max(1, min(grid_n, _cdiv(rows_needed, 8)))
    tm = _round_up(_cdiv(rows_needed, grid_n), 8)

    rows_p = tm * grid_n
    Mp = rows_p * pack
    if Mp != M:                                 # pad < one tile; skipped when aligned
        x2d = jnp.pad(x2d, ((0, Mp - M), (0, 0)))
    xp = x2d.reshape(rows_p, pCin)              # contiguous reshape: free

    # Block-diagonal weights / tiled biases (identity when pack == 1).
    if pack > 1:
        w1_k = jnp.kron(jnp.eye(pack, dtype=w1.dtype), w1)     # (pCin, pHd)
        w2_k = jnp.kron(jnp.eye(pack, dtype=w2.dtype), w2)     # (pHd, pCout)
        b1_k = jnp.tile(b1, pack)
        b2_k = jnp.tile(b2, pack)
    else:
        w1_k, w2_k, b1_k, b2_k = w1, w2, b1, b2
    b1_k = b1_k.astype(jnp.float32).reshape(1, pHd)
    b2_k = b2_k.astype(jnp.float32).reshape(1, pCout)

    footprint = weight_bytes + 2 * 4 * tm * (pCin + pCout) + 4 * 4 * tm * pHd
    vmem_limit = int(min(0.85 * vmem_cap, max(2 * footprint, 32 << 20)))

    out = pl.pallas_call(
        _mlp_kernel,
        out_shape=jax.ShapeDtypeStruct((rows_p, pCout), x.dtype),
        grid_spec=pltpu.PrefetchScalarGridSpec(
            num_scalar_prefetch=0,
            grid=(grid_n,),
            in_specs=[
                pl.BlockSpec((tm, pCin), lambda i: (i, 0)),
                pl.BlockSpec((pCin, pHd), lambda i: (0, 0)),    # resident weights
                pl.BlockSpec((1, pHd), lambda i: (0, 0)),
                pl.BlockSpec((pHd, pCout), lambda i: (0, 0)),
                pl.BlockSpec((1, pCout), lambda i: (0, 0)),
            ],
            out_specs=pl.BlockSpec((tm, pCout), lambda i: (i, 0)),
        ),
        compiler_params=pltpu.CompilerParams(
            dimension_semantics=("parallel",),   # v7x: shard rows over both TCs
            vmem_limit_bytes=vmem_limit,
        ),
    )(xp, w1_k, b1_k, w2_k, b2_k)

    out2d = out.reshape(Mp, Cout)               # contiguous unpack: free
    if Mp != M:
        out2d = out2d[:M]
    return out2d.reshape(lead_shape + (Cout,))


# ----------------------------------------------------------------------------
# Demo / correctness check
# ----------------------------------------------------------------------------

def _reference(x, w1, b1, w2, b2):
    hp = jax.lax.Precision.HIGHEST
    h = jnp.dot(x, w1, precision=hp, preferred_element_type=jnp.float32) + b1
    h = jax.nn.gelu(h, approximate=False)
    y = jnp.dot(h, w2, precision=hp, preferred_element_type=jnp.float32) + b2
    return y.astype(x.dtype)


if __name__ == "__main__":
    # Small shapes consistent with the module: tokens (B, L, C), mlp_ratio = 4.
    B, L, Cin, Hd = 2, 64, 32, 128

    key = jax.random.PRNGKey(0)
    k1, k2, k3, k4, k5 = jax.random.split(key, 5)
    x = jax.random.normal(k1, (B, L, Cin), jnp.float32)
    w1 = 0.05 * jax.random.normal(k2, (Cin, Hd), jnp.float32)
    b1 = 0.05 * jax.random.normal(k3, (Hd,), jnp.float32)
    w2 = 0.05 * jax.random.normal(k4, (Hd, Cin), jnp.float32)
    b2 = 0.05 * jax.random.normal(k5, (Cin,), jnp.float32)

    fwd = jax.jit(mlp_forward)
    out = fwd(x, w1, b1, w2, b2)
    jax.block_until_ready(out)

    assert out.shape == (B, L, Cin) and out.dtype == jnp.float32

    ref = _reference(x, w1, b1, w2, b2)
    err = float(jnp.max(jnp.abs(out - ref)))
    assert err < 2e-3, f"max abs error vs reference: {err}"

    print("KERNEL_OK")
</pallas_src>

<mosaic_0001>
module attributes {stable_mosaic.version = 11 : i64} {
  func.func @_mlp_kernel(%arg0: i32, %arg1: memref<32x128xf32, #tpu.memory_space<vmem>>, %arg2: memref<128x512xf32, #tpu.memory_space<vmem>>, %arg3: memref<1x512xf32, #tpu.memory_space<vmem>>, %arg4: memref<512x128xf32, #tpu.memory_space<vmem>>, %arg5: memref<1x128xf32, #tpu.memory_space<vmem>>, %arg6: memref<32x128xf32, #tpu.memory_space<vmem>>) attributes {dimension_semantics = [#tpu.dimension_semantics<parallel>], iteration_bounds = array<i64: 1>, scalar_prefetch = 0 : i64, scratch_operands = 0 : i64, tpu.core_type = #tpu.core_type<tc>, window_params = [{transform_indices = @transform_0, window_bounds = array<i64: 32, 128>}, {pipeline_mode = #tpu.pipeline_mode<synchronous>, transform_indices = @transform_1, window_bounds = array<i64: 128, 512>}, {pipeline_mode = #tpu.pipeline_mode<synchronous>, transform_indices = @transform_2, window_bounds = array<i64: 1, 512>}, {pipeline_mode = #tpu.pipeline_mode<synchronous>, transform_indices = @transform_3, window_bounds = array<i64: 512, 128>}, {pipeline_mode = #tpu.pipeline_mode<synchronous>, transform_indices = @transform_4, window_bounds = array<i64: 1, 128>}, {transform_indices = @transform_5, window_bounds = array<i64: 32, 128>}]} {
    %c0 = arith.constant 0 : index
    %c0_0 = arith.constant 0 : index
    %0 = vector.load %arg1[%c0, %c0_0] : memref<32x128xf32, #tpu.memory_space<vmem>>, vector<32x128xf32>
    %c0_1 = arith.constant 0 : index
    %c0_2 = arith.constant 0 : index
    %1 = vector.load %arg2[%c0_1, %c0_2] : memref<128x512xf32, #tpu.memory_space<vmem>>, vector<128x512xf32>
    %cst = arith.constant dense<0.000000e+00> : vector<32x512xf32>
    %2 = tpu.matmul %0, %1, %cst {dimension_numbers = #tpu.dot_dimension_numbers<[1], [0], [0], [1], [0, 0, 1, 1], [], []>} : vector<32x128xf32>, vector<128x512xf32>, vector<32x512xf32> -> vector<32x512xf32>
    %c0_3 = arith.constant 0 : index
    %c0_4 = arith.constant 0 : index
    %3 = vector.load %arg3[%c0_3, %c0_4] : memref<1x512xf32, #tpu.memory_space<vmem>>, vector<1x512xf32>
    %4 = vector.broadcast %3 : vector<1x512xf32> to vector<32x512xf32>
    %5 = arith.addf %2, %4 : vector<32x512xf32>
    %cst_5 = arith.constant 5.000000e-01 : f32
    %6 = vector.broadcast %cst_5 : f32 to vector<32x512xf32>
    %7 = arith.mulf %6, %5 : vector<32x512xf32>
    %cst_6 = arith.constant 0.707106769 : f32
    %8 = vector.broadcast %cst_6 : f32 to vector<32x512xf32>
    %9 = arith.mulf %5, %8 : vector<32x512xf32>
    %10 = math.absf %9 : vector<32x512xf32>
    %cst_7 = arith.constant 0.327591091 : f32
    %11 = vector.broadcast %cst_7 : f32 to vector<32x512xf32>
    %12 = arith.mulf %11, %10 : vector<32x512xf32>
    %cst_8 = arith.constant 1.000000e+00 : f32
    %13 = vector.broadcast %cst_8 : f32 to vector<32x512xf32>
    %14 = arith.addf %13, %12 : vector<32x512xf32>
    %15 = tpu.reciprocal %14 {approx = true} : vector<32x512xf32> -> vector<32x512xf32>
    %16 = arith.mulf %14, %15 : vector<32x512xf32>
    %cst_9 = arith.constant 2.000000e+00 : f32
    %17 = vector.broadcast %cst_9 : f32 to vector<32x512xf32>
    %18 = arith.subf %17, %16 : vector<32x512xf32>
    %19 = arith.mulf %15, %18 : vector<32x512xf32>
    %cst_10 = arith.constant 1.06140542 : f32
    %20 = vector.broadcast %cst_10 : f32 to vector<32x512xf32>
    %21 = arith.mulf %20, %19 : vector<32x512xf32>
    %cst_11 = arith.constant -1.45315206 : f32
    %22 = vector.broadcast %cst_11 : f32 to vector<32x512xf32>
    %23 = arith.addf %21, %22 : vector<32x512xf32>
    %24 = arith.mulf %23, %19 : vector<32x512xf32>
    %cst_12 = arith.constant 1.42141378 : f32
    %25 = vector.broadcast %cst_12 : f32 to vector<32x512xf32>
    %26 = arith.addf %24, %25 : vector<32x512xf32>
    %27 = arith.mulf %26, %19 : vector<32x512xf32>
    %cst_13 = arith.constant -0.284496725 : f32
    %28 = vector.broadcast %cst_13 : f32 to vector<32x512xf32>
    %29 = arith.addf %27, %28 : vector<32x512xf32>
    %30 = arith.mulf %29, %19 : vector<32x512xf32>
    %cst_14 = arith.constant 0.254829586 : f32
    %31 = vector.broadcast %cst_14 : f32 to vector<32x512xf32>
    %32 = arith.addf %30, %31 : vector<32x512xf32>
    %33 = arith.mulf %32, %19 : vector<32x512xf32>
    %cst_15 = arith.constant 0.000000e+00 : f32
    %34 = vector.broadcast %cst_15 : f32 to vector<32x512xf32>
    %35 = arith.subf %34, %10 : vector<32x512xf32>
    %36 = arith.mulf %35, %10 : vector<32x512xf32>
    %37 = math.exp %36 : vector<32x512xf32>
    %38 = arith.mulf %33, %37 : vector<32x512xf32>
    %cst_16 = arith.constant 1.000000e+00 : f32
    %39 = vector.broadcast %cst_16 : f32 to vector<32x512xf32>
    %40 = arith.subf %39, %38 : vector<32x512xf32>
    %cst_17 = arith.constant 0.000000e+00 : f32
    %41 = vector.broadcast %cst_17 : f32 to vector<32x512xf32>
    %42 = arith.cmpf oge, %9, %41 : vector<32x512xf32>
    %cst_18 = arith.constant 0.000000e+00 : f32
    %43 = vector.broadcast %cst_18 : f32 to vector<32x512xf32>
    %44 = arith.subf %43, %40 : vector<32x512xf32>
    %45 = arith.select %42, %40, %44 : vector<32x512xi1>, vector<32x512xf32>
    %cst_19 = arith.constant 1.000000e+00 : f32
    %46 = vector.broadcast %cst_19 : f32 to vector<32x512xf32>
    %47 = arith.addf %46, %45 : vector<32x512xf32>
    %48 = arith.mulf %7, %47 : vector<32x512xf32>
    %c0_20 = arith.constant 0 : index
    %c0_21 = arith.constant 0 : index
    %49 = vector.load %arg4[%c0_20, %c0_21] : memref<512x128xf32, #tpu.memory_space<vmem>>, vector<512x128xf32>
    %cst_22 = arith.constant dense<0.000000e+00> : vector<32x128xf32>
    %50 = tpu.matmul %48, %49, %cst_22 {dimension_numbers = #tpu.dot_dimension_numbers<[1], [0], [0], [1], [0, 0, 1, 1], [], []>} : vector<32x512xf32>, vector<512x128xf32>, vector<32x128xf32> -> vector<32x128xf32>
    %c0_23 = arith.constant 0 : index
    %c0_24 = arith.constant 0 : index
    %51 = vector.load %arg5[%c0_23, %c0_24] : memref<1x128xf32, #tpu.memory_space<vmem>>, vector<1x128xf32>
    %52 = vector.broadcast %51 : vector<1x128xf32> to vector<32x128xf32>
    %53 = arith.addf %50, %52 : vector<32x128xf32>
    %c0_25 = arith.constant 0 : index
    %c0_26 = arith.constant 0 : index
    %54 = vector.load %arg6[%c0_25, %c0_26] : memref<32x128xf32, #tpu.memory_space<vmem>>, vector<32x128xf32>
    tpu.vector_store %arg6[%c0_25, %c0_26], %53 {strides = array<i32>} : memref<32x128xf32, #tpu.memory_space<vmem>>, vector<32x128xf32>,
    return
  }
  func.func @transform_0(%arg0: i32) -> (i32, i32) {
    %c0_i32 = arith.constant 0 : i32
    %c0_i32_0 = arith.constant 0 : i32
    return %arg0, %c0_i32 : i32, i32
  }
  func.func @transform_1(%arg0: i32) -> (i32, i32) {
    %c0_i32 = arith.constant 0 : i32
    %c0_i32_0 = arith.constant 0 : i32
    %c0_i32_1 = arith.constant 0 : i32
    return %c0_i32, %c0_i32_0 : i32, i32
  }
  func.func @transform_2(%arg0: i32) -> (i32, i32) {
    %c0_i32 = arith.constant 0 : i32
    %c0_i32_0 = arith.constant 0 : i32
    %c0_i32_1 = arith.constant 0 : i32
    return %c0_i32, %c0_i32_0 : i32, i32
  }
  func.func @transform_3(%arg0: i32) -> (i32, i32) {
    %c0_i32 = arith.constant 0 : i32
    %c0_i32_0 = arith.constant 0 : i32
    %c0_i32_1 = arith.constant 0 : i32
    return %c0_i32, %c0_i32_0 : i32, i32
  }
  func.func @transform_4(%arg0: i32) -> (i32, i32) {
    %c0_i32 = arith.constant 0 : i32
    %c0_i32_0 = arith.constant 0 : i32
    %c0_i32_1 = arith.constant 0 : i32
    return %c0_i32, %c0_i32_0 : i32, i32
  }
  func.func @transform_5(%arg0: i32) -> (i32, i32) {
    %c0_i32 = arith.constant 0 : i32
    %c0_i32_0 = arith.constant 0 : i32
    return %arg0, %c0_i32 : i32, i32
  }
}

</mosaic_0001>

<bundles_post_ra>
// kernel: tile.17
= control target key start
LH: loop header
LB: loop body
LE: loop exit
PB: predicated region body
PF: predicated region fallthrough
CT: control target
= control target key end

     0   :  { %s22_s0 = inlined_call_operand.vmem [shape: f32[32], index: 0, kind: input, shape index: {}]   ;;  %s23_s1 = inlined_call_operand.vmem [shape: f32[4,32], index: 1, kind: output, shape index: {}]  }
   0x1   :  { %v4_v0 = vld [vmem:[%s22_s0] ss:$0 sm:$0xff] }
   0x2   :  { %5 = vst [vmem:[%s23_s1] sm:$0xf] %v4_v0 }

// kernel: tile.19
= control target key start
LH: loop header
LB: loop body
LE: loop exit
PB: predicated region body
PF: predicated region fallthrough
CT: control target
= control target key end

     0   :  { %vm7_vm0 = vcmask 261120   ;;  %s37_s8 = smov 32   ;;  %s38_s9 = smov 64   ;;  %vm13_vm1 = vcmask 1048320   ;;  %vm19_vm2 = vcmask 785920   ;;  %vm25_vm3 = vcmask 523520   ;;  %s55_s0 = inlined_call_operand.vmem [shape: f32[4,32], index: 0, kind: input, shape index: {}]   ;;  %s56_s1 = inlined_call_operand.vmem [shape: f32[1,128], index: 1, kind: output, shape index: {}]  }
   0x1   :  { %v4_v0 = vld [vmem:[%s55_s0] sm:$0xf]  ;;  %s36_s0 = smov 96  }
   0x2   :  { %5 = vst [vmem:[#allocation1] sm:$0xf] %v4_v0 }
   0x9   :  { %v10_v1 = vld [vmem:[#allocation1 + $0x3] sm:$0x1]   ;;  %v22_v2 = vld [vmem:[#allocation1 + $0x1] sm:$0x1]   ;;  %v6_v3 = vld [vmem:[#allocation1] sm:$0x1]  }
   0xa   :  { %11 = vrot.lane.b32.xlu0 %v10_v1, %s36_s0  ;;  %23 = vrot.lane.b32.xlu1 %v22_v2, %s37_s8  ;;  %v16_v4 = vld [vmem:[#allocation1 + $0x2] sm:$0x1]   ;;  %8 = vst.msk [vmem:[#allocation0] sm:$0x1] %vm7_vm0, %v6_v3  }
   0xe   :  { %17 = vrot.lane.b32.xlu0 %v16_v4, %s38_s9 }
  0x7c   :  { %v12_v5 = vpop.permute.xlu0 %11   ;;  %v24_v6 = vpop.permute.xlu1 %23  }
  0x7d   :  { %14 = vst.msk [vmem:[#allocation0] sm:$0x1] %vm13_vm1, %v12_v5  }
  0x80   :  { %v18_v7 = vpop.permute.xlu0 %17  }
  0x81   :  { %20 = vst.msk [vmem:[#allocation0] sm:$0x1] %vm19_vm2, %v18_v7  }
  0x82   :  { %26 = vst.msk [vmem:[#allocation0] sm:$0x1] %vm25_vm3, %v24_v6  }
  0x89   :  { %v30_v8 = vld [vmem:[#allocation0] sm:$0x1] }
  0x8a   :  { %32 = vst [vmem:[%s56_s1] sm:$0x1] %v30_v8 }

// kernel: tile.13
= control target key start
LH: loop header
LB: loop body
LE: loop exit
PB: predicated region body
PF: predicated region fallthrough
CT: control target
= control target key end

     0   :  { %s22_s0 = inlined_call_operand.vmem [shape: f32[128], index: 0, kind: input, shape index: {}]   ;;  %s23_s1 = inlined_call_operand.vmem [shape: f32[4,128], index: 1, kind: output, shape index: {}]  }
   0x1   :  { %v4_v0 = vld [vmem:[%s22_s0] ss:$0 sm:$0xff] }
   0x2   :  { %5 = vst [vmem:[%s23_s1] sm:$0xf] %v4_v0 }

// kernel: mlp_forward.1
= control target key start
LH: loop header
LB: loop body
LE: loop exit
PB: predicated region body
PF: predicated region fallthrough
CT: control target
= control target key end

     0   :  { %v1283_v3 = vmov 0.0   ;;  %s2132_s1 = inlined_call_operand.vmem [shape: f32[128,512], index: 1, kind: input, shape index: {}]   ;;  %s2133_s0 = inlined_call_operand.vmem [shape: f32[32,128], index: 0, kind: input, shape index: {}]   ;;  %s2134_s3 = inlined_call_operand.vmem [shape: f32[512,128], index: 3, kind: input, shape index: {}]   ;;  %s2135_s2 = inlined_call_operand.vmem [shape: f32[1,512], index: 2, kind: input, shape index: {}]   ;;  %s2136_s4 = inlined_call_operand.vmem [shape: f32[1,128], index: 4, kind: input, shape index: {}]   ;;  %s2137_s5 = inlined_call_operand.vmem [shape: f32[32,128], index: 5, kind: output, shape index: {}]  }
   0x1   :  { %v25_v0 = vld [vmem:[%s2132_s1 + $0x8] sm:$0xff]  ;;  %v27_v2 = vld [vmem:[%s2132_s1 + $0x18] sm:$0xff]  ;;  %174 = vmatprep.mubr.f32.mxu0 %v1283_v3  ;;  %263 = vmatprep.mubr.f32.mxu1 %v1283_v3  ;;  %v24_v6 = vld [vmem:[%s2132_s1] sm:$0xff] }
   0x2   :  { %v29_v1 = vld [vmem:[%s2132_s1 + $0x28] sm:$0xff]  ;;  %v31_v5 = vld [vmem:[%s2132_s1 + $0x38] sm:$0xff]  ;;  %v28_v7 = vld [vmem:[%s2132_s1 + $0x20] sm:$0xff] }
   0x3   :  { %v1090_v4 = vpack.c.bf16 %v29_v1, %v25_v0  ;;  %v1122_v8 = vpack.c.bf16 %v31_v5, %v27_v2  ;;  %v1092_v9 = vpack.c.bf16 %v28_v7, %v24_v6  ;;  %v26_v10 = vld [vmem:[%s2132_s1 + $0x10] sm:$0xff]  ;;  %v33_v12 = vld [vmem:[%s2132_s1 + $0x48] sm:$0xff]  ;;  %v35_v15 = vld [vmem:[%s2132_s1 + $0x58] sm:$0xff] }
   0x4   :  { %v30_v11 = vld [vmem:[%s2132_s1 + $0x30] sm:$0xff]  ;;  %v37_v14 = vld [vmem:[%s2132_s1 + $0x68] sm:$0xff]  ;;  %v39_v16 = vld [vmem:[%s2132_s1 + $0x78] sm:$0xff] }
   0x5   :  { %1091 = vmatprep.subr.bf16.mxu0 %v1090_v4  ;;  %v1124_v13 = vpack.c.bf16 %v30_v11, %v26_v10  ;;  %1123 = vmatprep.subr.bf16.mxu1 %v1122_v8  ;;  %v1094_v17 = vpack.c.bf16 %v37_v14, %v33_v12  ;;  %v1126_v18 = vpack.c.bf16 %v39_v16, %v35_v15  ;;  %v32_v19 = vld [vmem:[%s2132_s1 + $0x40] sm:$0xff]  ;;  %v34_v21 = vld [vmem:[%s2132_s1 + $0x50] sm:$0xff]  ;;  %v41_v24 = vld [vmem:[%s2132_s1 + $0x88] sm:$0xff] }
   0x6   :  { %1093 = vmatpush1.bf16.msra.mxu0 %v1092_v9  ;;  %v36_v20 = vld [vmem:[%s2132_s1 + $0x60] sm:$0xff]  ;;  %v38_v23 = vld [vmem:[%s2132_s1 + $0x70] sm:$0xff]  ;;  %v45_v25 = vld [vmem:[%s2132_s1 + $0xa8] sm:$0xff] }
   0x7   :  { %1125 = vmatpush1.bf16.msra.mxu1 %v1124_v13  ;;  %v1096_v22 = vpack.c.bf16 %v36_v20, %v32_v19  ;;  %1095 = vmatprep.subr.bf16.mxu0 %v1094_v17  ;;  %v1128_v26 = vpack.c.bf16 %v38_v23, %v34_v21  ;;  %v1098_v27 = vpack.c.bf16 %v45_v25, %v41_v24  ;;  %v43_v28 = vld [vmem:[%s2132_s1 + $0x98] sm:$0xff]  ;;  %v40_v30 = vld [vmem:[%s2132_s1 + $0x80] sm:$0xff]  ;;  %v42_v33 = vld [vmem:[%s2132_s1 + $0x90] sm:$0xff] }
   0x8   :  { %1127 = vmatprep.subr.bf16.mxu1 %v1126_v18  ;;  %v47_v29 = vld [vmem:[%s2132_s1 + $0xb8] sm:$0xff]  ;;  %v44_v32 = vld [vmem:[%s2132_s1 + $0xa0] sm:$0xff]  ;;  %v46_v34 = vld [vmem:[%s2132_s1 + $0xb0] sm:$0xff] }
   0x9   :  { %v1130_v31 = vpack.c.bf16 %v47_v29, %v43_v28  ;;  %v1100_v35 = vpack.c.bf16 %v44_v32, %v40_v30  ;;  %v49_v36 = vld [vmem:[%s2132_s1 + $0xc8] sm:$0xff]  ;;  %v51_v38 = vld [vmem:[%s2132_s1 + $0xd8] sm:$0xff]  ;;  %v1132_v39 = vpack.c.bf16 %v46_v34, %v42_v33  ;;  %v48_v42 = vld [vmem:[%s2132_s1 + $0xc0] sm:$0xff] }
   0xa   :  { %1097 = vmatpush1.bf16.msra.mxu0 %v1096_v22  ;;  %v53_v37 = vld [vmem:[%s2132_s1 + $0xe8] sm:$0xff]  ;;  %v55_v41 = vld [vmem:[%s2132_s1 + $0xf8] sm:$0xff]  ;;  %v52_v43 = vld [vmem:[%s2132_s1 + $0xe0] sm:$0xff] }
   0xb   :  { %1129 = vmatpush1.bf16.msra.mxu1 %v1128_v26  ;;  %1099 = vmatprep.subr.bf16.mxu0 %v1098_v27  ;;  %v1102_v40 = vpack.c.bf16 %v53_v37, %v49_v36  ;;  %v1134_v44 = vpack.c.bf16 %v55_v41, %v51_v38  ;;  %v50_v45 = vld [vmem:[%s2132_s1 + $0xd0] sm:$0xff]  ;;  %v57_v47 = vld [vmem:[%s2132_s1 + $0x108] sm:$0xff]  ;;  %v59_v49 = vld [vmem:[%s2132_s1 + $0x118] sm:$0xff]  ;;  %v1104_v51 = vpack.c.bf16 %v52_v43, %v48_v42 }
   0xc   :  { %1131 = vmatprep.subr.bf16.mxu1 %v1130_v31  ;;  %v54_v46 = vld [vmem:[%s2132_s1 + $0xf0] sm:$0xff]  ;;  %v61_v48 = vld [vmem:[%s2132_s1 + $0x128] sm:$0xff]  ;;  %v63_v50 = vld [vmem:[%s2132_s1 + $0x138] sm:$0xff] }
   0xd   :  { %v1136_v52 = vpack.c.bf16 %v54_v46, %v50_v45  ;;  %v1106_v53 = vpack.c.bf16 %v61_v48, %v57_v47  ;;  %v56_v54 = vld [vmem:[%s2132_s1 + $0x100] sm:$0xff]  ;;  %v58_v56 = vld [vmem:[%s2132_s1 + $0x110] sm:$0xff]  ;;  %v1138_v57 = vpack.c.bf16 %v63_v50, %v59_v49  ;;  %v65_v59 = vld [vmem:[%s2132_s1 + $0x148] sm:$0xff] }
   0xe   :  { %1101 = vmatpush1.bf16.msra.mxu0 %v1100_v35  ;;  %v60_v55 = vld [vmem:[%s2132_s1 + $0x120] sm:$0xff]  ;;  %v62_v58 = vld [vmem:[%s2132_s1 + $0x130] sm:$0xff]  ;;  %v69_v60 = vld [vmem:[%s2132_s1 + $0x168] sm:$0xff] }
   0xf   :  { %1133 = vmatpush1.bf16.msra.mxu1 %v1132_v39  ;;  %1103 = vmatprep.subr.bf16.mxu0 %v1102_v40  ;;  %v67_v61 = vld [vmem:[%s2132_s1 + $0x158] sm:$0xff]  ;;  %v1108_v63 = vpack.c.bf16 %v60_v55, %v56_v54  ;;  %v1140_v0 = vpack.c.bf16 %v62_v58, %v58_v56  ;;  %v1110_v1 = vpack.c.bf16 %v69_v60, %v65_v59  ;;  %v64_v2 = vld [vmem:[%s2132_s1 + $0x140] sm:$0xff]  ;;  %v66_v5 = vld [vmem:[%s2132_s1 + $0x150] sm:$0xff] }
  0x10   :  { %1135 = vmatprep.subr.bf16.mxu1 %v1134_v44  ;;  %v71_v62 = vld [vmem:[%s2132_s1 + $0x178] sm:$0xff]  ;;  %v68_v4 = vld [vmem:[%s2132_s1 + $0x160] sm:$0xff]  ;;  %v70_v7 = vld [vmem:[%s2132_s1 + $0x170] sm:$0xff] }
  0x11   :  { %v1142_v6 = vpack.c.bf16 %v71_v62, %v67_v61  ;;  %v73_v8 = vld [vmem:[%s2132_s1 + $0x188] sm:$0xff]  ;;  %v75_v10 = vld [vmem:[%s2132_s1 + $0x198] sm:$0xff]  ;;  %v1112_v12 = vpack.c.bf16 %v68_v4, %v64_v2  ;;  %v1144_v13 = vpack.c.bf16 %v70_v7, %v66_v5  ;;  %v72_v15 = vld [vmem:[%s2132_s1 + $0x180] sm:$0xff] }
  0x12   :  { %1105 = vmatpush1.bf16.msra.mxu0 %v1104_v51  ;;  %v77_v9 = vld [vmem:[%s2132_s1 + $0x1a8] sm:$0xff]  ;;  %v79_v11 = vld [vmem:[%s2132_s1 + $0x1b8] sm:$0xff]  ;;  %v76_v16 = vld [vmem:[%s2132_s1 + $0x1a0] sm:$0xff] }
  0x13   :  { %1137 = vmatpush1.bf16.msra.mxu1 %v1136_v52  ;;  %1107 = vmatprep.subr.bf16.mxu0 %v1106_v53  ;;  %v1114_v14 = vpack.c.bf16 %v77_v9, %v73_v8  ;;  %v74_v17 = vld [vmem:[%s2132_s1 + $0x190] sm:$0xff]  ;;  %v1146_v18 = vpack.c.bf16 %v79_v11, %v75_v10  ;;  %v81_v20 = vld [vmem:[%s2132_s1 + $0x1c8] sm:$0xff]  ;;  %v83_v22 = vld [vmem:[%s2132_s1 + $0x1d8] sm:$0xff]  ;;  %v1116_v24 = vpack.c.bf16 %v76_v16, %v72_v15 }
  0x14   :  { %1139 = vmatprep.subr.bf16.mxu1 %v1138_v57  ;;  %v78_v19 = vld [vmem:[%s2132_s1 + $0x1b0] sm:$0xff]  ;;  %v85_v21 = vld [vmem:[%s2132_s1 + $0x1e8] sm:$0xff]  ;;  %v87_v23 = vld [vmem:[%s2132_s1 + $0x1f8] sm:$0xff] }
  0x15   :  { %v1148_v25 = vpack.c.bf16 %v78_v19, %v74_v17  ;;  %v1118_v26 = vpack.c.bf16 %v85_v21, %v81_v20  ;;  %v80_v27 = vld [vmem:[%s2132_s1 + $0x1c0] sm:$0xff]  ;;  %v1150_v29 = vpack.c.bf16 %v87_v23, %v83_v22  ;;  %v82_v30 = vld [vmem:[%s2132_s1 + $0x1d0] sm:$0xff]  ;;  %v21_v35 = vld [vmem:[%s2133_s0 + $0x8] sm:$0xff] }
  0x16   :  { %1109 = vmatpush1.bf16.msra.mxu0 %v1108_v63  ;;  %v84_v28 = vld [vmem:[%s2132_s1 + $0x1e0] sm:$0xff]  ;;  %v86_v31 = vld [vmem:[%s2132_s1 + $0x1f0] sm:$0xff]  ;;  %v23_v37 = vld [vmem:[%s2133_s0 + $0x18] sm:$0xff] }
  0x17   :  { %1141 = vmatpush1.bf16.msra.mxu1 %v1140_v0  ;;  %1111 = vmatprep.subr.bf16.mxu0 %v1110_v1  ;;  %v1120_v32 = vpack.c.bf16 %v84_v28, %v80_v27  ;;  %v1152_v33 = vpack.c.bf16 %v86_v31, %v82_v30  ;;  %v20_v34 = vld [vmem:[%s2133_s0] sm:$0xff]  ;;  %v22_v36 = vld [vmem:[%s2133_s0 + $0x10] sm:$0xff]  ;;  %v769_v39 = vld [vmem:[%s2134_s3 + $0x88] sm:$0xff] }
  0x18   :  { %1143 = vmatprep.subr.bf16.mxu1 %v1142_v6  ;;  %v768_v38 = vld [vmem:[%s2134_s3 + $0x80] sm:$0xff]  ;;  %v801_v42 = vld [vmem:[%s2134_s3 + $0x188] sm:$0xff]  ;;  %v770_v49 = vld [vmem:[%s2134_s3 + $0x90] sm:$0xff] }
  0x19   :  { %v800_v40 = vld [vmem:[%s2134_s3 + $0x180] sm:$0xff]  ;;  %v1154_v41 = vpack.c.bf16 %v769_v39, %v768_v38  ;;  %v753_v43 = vld [vmem:[%s2134_s3 + $0x8] sm:$0xff]  ;;  %v771_v50 = vld [vmem:[%s2134_s3 + $0x98] sm:$0xff] }
  0x1a   :  { %1113 = vmatpush1.bf16.msra.mxu0 %v1112_v12  ;;  %v1186_v44 = vpack.c.bf16 %v801_v42, %v800_v40  ;;  %v784_v46 = vld [vmem:[%s2134_s3 + $0x100] sm:$0xff]  ;;  %v785_v47 = vld [vmem:[%s2134_s3 + $0x108] sm:$0xff]  ;;  %v802_v51 = vld [vmem:[%s2134_s3 + $0x190] sm:$0xff]  ;;  %v1158_v52 = vpack.c.bf16 %v771_v50, %v770_v49 }
  0x1b   :  { %1145 = vmatpush1.bf16.msra.mxu1 %v1144_v13  ;;  %1115 = vmatprep.subr.bf16.mxu0 %v1114_v14  ;;  %v1188_v48 = vpack.c.bf16 %v785_v47, %v784_v46  ;;  %v803_v53 = vld [vmem:[%s2134_s3 + $0x198] sm:$0xff]  ;;  %v754_v54 = vld [vmem:[%s2134_s3 + $0x10] sm:$0xff]  ;;  %v772_v61 = vld [vmem:[%s2134_s3 + $0xa0] sm:$0xff] }
  0x1c   :  { %1147 = vmatprep.subr.bf16.mxu1 %v1146_v18  ;;  %v755_v55 = vld [vmem:[%s2134_s3 + $0x18] sm:$0xff]  ;;  %v1190_v56 = vpack.c.bf16 %v803_v53, %v802_v51  ;;  %v786_v58 = vld [vmem:[%s2134_s3 + $0x110] sm:$0xff]  ;;  %v773_v62 = vld [vmem:[%s2134_s3 + $0xa8] sm:$0xff] }
  0x1d   :  { %v1160_v57 = vpack.c.bf16 %v755_v55, %v754_v54  ;;  %v787_v59 = vld [vmem:[%s2134_s3 + $0x118] sm:$0xff]  ;;  %v804_v63 = vld [vmem:[%s2134_s3 + $0x1a0] sm:$0xff]  ;;  %v1162_v0 = vpack.c.bf16 %v773_v62, %v772_v61  ;;  %v805_v1 = vld [vmem:[%s2134_s3 + $0x1a8] sm:$0xff] }
  0x1e   :  { %1117 = vmatpush1.bf16.msra.mxu0 %v1116_v24  ;;  %v1192_v60 = vpack.c.bf16 %v787_v59, %v786_v58  ;;  %v756_v2 = vld [vmem:[%s2134_s3 + $0x20] sm:$0xff]  ;;  %v757_v4 = vld [vmem:[%s2134_s3 + $0x28] sm:$0xff]  ;;  %v1194_v5 = vpack.c.bf16 %v805_v1, %v804_v63  ;;  %v774_v10 = vld [vmem:[%s2134_s3 + $0xb0] sm:$0xff] }
  0x1f   :  { %1149 = vmatpush1.bf16.msra.mxu1 %v1148_v25  ;;  %1119 = vmatprep.subr.bf16.mxu0 %v1118_v26  ;;  %v1164_v6 = vpack.c.bf16 %v757_v4, %v756_v2  ;;  %v788_v7 = vld [vmem:[%s2134_s3 + $0x120] sm:$0xff]  ;;  %v789_v8 = vld [vmem:[%s2134_s3 + $0x128] sm:$0xff]  ;;  %v775_v11 = vld [vmem:[%s2134_s3 + $0xb8] sm:$0xff] }
  0x20   :  { %1151 = vmatprep.subr.bf16.mxu1 %v1150_v29  ;;  %v1196_v9 = vpack.c.bf16 %v789_v8, %v788_v7  ;;  %v806_v12 = vld [vmem:[%s2134_s3 + $0x1b0] sm:$0xff]  ;;  %v1166_v13 = vpack.c.bf16 %v775_v11, %v774_v10  ;;  %v807_v14 = vld [vmem:[%s2134_s3 + $0x1b8] sm:$0xff]  ;;  %v776_v22 = vld [vmem:[%s2134_s3 + $0xc0] sm:$0xff] }
  0x21   :  { %v758_v15 = vld [vmem:[%s2134_s3 + $0x30] sm:$0xff]  ;;  %v759_v16 = vld [vmem:[%s2134_s3 + $0x38] sm:$0xff]  ;;  %v1198_v17 = vpack.c.bf16 %v807_v14, %v806_v12  ;;  %v777_v23 = vld [vmem:[%s2134_s3 + $0xc8] sm:$0xff] }
  0x22   :  { %1121 = vmatpush1.bf16.msra.mxu0 %v1120_v32  ;;  %v1168_v18 = vpack.c.bf16 %v759_v16, %v758_v15  ;;  %v790_v19 = vld [vmem:[%s2134_s3 + $0x130] sm:$0xff]  ;;  %v791_v20 = vld [vmem:[%s2134_s3 + $0x138] sm:$0xff]  ;;  %v808_v24 = vld [vmem:[%s2134_s3 + $0x1c0] sm:$0xff]  ;;  %v1170_v25 = vpack.c.bf16 %v777_v23, %v776_v22 }
  0x23   :  { %1153 = vmatpush1.bf16.msra.mxu1 %v1152_v33  ;;  %1155 = vmatprep.subr.bf16.mxu0 %v1154_v41  ;;  %v1200_v21 = vpack.c.bf16 %v791_v20, %v790_v19  ;;  %v809_v26 = vld [vmem:[%s2134_s3 + $0x1c8] sm:$0xff]  ;;  %v760_v27 = vld [vmem:[%s2134_s3 + $0x40] sm:$0xff]  ;;  %v778_v33 = vld [vmem:[%s2134_s3 + $0xd0] sm:$0xff] }
  0x24   :  { %1187 = vmatprep.subr.bf16.mxu1 %v1186_v44  ;;  %v761_v28 = vld [vmem:[%s2134_s3 + $0x48] sm:$0xff]  ;;  %v1202_v29 = vpack.c.bf16 %v809_v26, %v808_v24  ;;  %v792_v31 = vld [vmem:[%s2134_s3 + $0x140] sm:$0xff]  ;;  %v762_v40 = vld [vmem:[%s2134_s3 + $0x50] sm:$0xff] }
  0x25   :  { %175 = vmatmul.mubr.f32.vlgmr.msra.gmra.mrb[0].mxu0 %v20_v34  ;;  %v1172_v30 = vpack.c.bf16 %v761_v28, %v760_v27  ;;  %v793_v32 = vld [vmem:[%s2134_s3 + $0x148] sm:$0xff]  ;;  %v763_v41 = vld [vmem:[%s2134_s3 + $0x58] sm:$0xff]  ;;  %v794_v42 = vld [vmem:[%s2134_s3 + $0x150] sm:$0xff] }
  0x26   :  { %264 = vmatmul.mubr.f32.vlgmr.msra.gmra.mrb[0].mxu1 %v20_v34  ;;  %180 = vmatprep.mubr.f32.mxu0 %v1283_v3  ;;  %v1204_v34 = vpack.c.bf16 %v793_v32, %v792_v31  ;;  %v780_v44 = vld [vmem:[%s2134_s3 + $0xe0] sm:$0xff]  ;;  %v813_v49 = vld [vmem:[%s2134_s3 + $0x1e8] sm:$0xff]  ;;  %v782_v55 = vld [vmem:[%s2134_s3 + $0xf0] sm:$0xff] }
  0x27   :  { %269 = vmatprep.mubr.f32.mxu1 %v1283_v3  ;;  %1189 = vmatpush3.bf16.msra.mxu1 %v1188_v48  ;;  %v812_v48 = vld [vmem:[%s2134_s3 + $0x1e0] sm:$0xff]  ;;  %v797_v54 = vld [vmem:[%s2134_s3 + $0x168] sm:$0xff]  ;;  %v815_v59 = vld [vmem:[%s2134_s3 + $0x1f8] sm:$0xff] }
  0x28   :  { %1191 = vmatprep.subr.bf16.mxu1 %v1190_v56  ;;  %v764_v50 = vld [vmem:[%s2134_s3 + $0x60] sm:$0xff]  ;;  %v1210_v51 = vpack.c.bf16 %v813_v49, %v812_v48  ;;  %v783_v56 = vld [vmem:[%s2134_s3 + $0xf8] sm:$0xff]  ;;  %v766_v62 = vld [vmem:[%s2134_s3 + $0x70] sm:$0xff] }
  0x29   :  { %181 = vmatmul.mubr.f32.gmra.mrb[2].mxu0 %v21_v35  ;;  %v796_v53 = vld [vmem:[%s2134_s3 + $0x160] sm:$0xff]  ;;  %v1182_v61 = vpack.c.bf16 %v783_v56, %v782_v55  ;;  %v767_v63 = vld [vmem:[%s2134_s3 + $0x78] sm:$0xff]  ;;  %v798_v1 = vld [vmem:[%s2134_s3 + $0x170] sm:$0xff] }
  0x2a   :  { %270 = vmatmul.mubr.f32.gmra.mrb[2].mxu1 %v21_v35  ;;  %186 = vmatprep.mubr.f32.mxu0 %v1283_v3  ;;  %v779_v35 = vld [vmem:[%s2134_s3 + $0xd8] sm:$0xff]  ;;  %v1184_v4 = vpack.c.bf16 %v767_v63, %v766_v62 }
  0x2b   :  { %275 = vmatprep.mubr.f32.mxu1 %v1283_v3  ;;  %1193 = vmatpush3.bf16.msra.mxu1 %v1192_v60  ;;  %v1174_v38 = vpack.c.bf16 %v779_v35, %v778_v33  ;;  %v1212_v60 = vpack.c.bf16 %v797_v54, %v796_v53  ;;  %v799_v2 = vld [vmem:[%s2134_s3 + $0x178] sm:$0xff] }
  0x2c   :  { %1195 = vmatprep.subr.bf16.mxu1 %v1194_v5  ;;  %v1216_v5 = vpack.c.bf16 %v799_v2, %v798_v1 }
  0x2d   :  { %187 = vmatmul.mubr.f32.gmra.mrb[4].mxu0 %v22_v36 }
  0x2e   :  { %276 = vmatmul.mubr.f32.gmra.mrb[4].mxu1 %v22_v36  ;;  %192 = vmatprep.mubr.f32.mxu0 %v1283_v3  ;;  %v810_v36 = vld [vmem:[%s2134_s3 + $0x1d0] sm:$0xff] }
  0x2f   :  { %281 = vmatprep.mubr.f32.mxu1 %v1283_v3  ;;  %v752_v3 = vld [vmem:[%s2134_s3] sm:$0xff]  ;;  %1197 = vmatpush3.bf16.msra.mxu1 %v1196_v9 }
  0x30   :  { %v1156_v45 = vpack.c.bf16 %v753_v43, %v752_v3  ;;  %1199 = vmatprep.subr.bf16.mxu1 %v1198_v17  ;;  %v1176_v3 = vpack.c.bf16 %v763_v41, %v762_v40  ;;  %v795_v43 = vld [vmem:[%s2134_s3 + $0x158] sm:$0xff]  ;;  %v88_v9 = vld [vmem:[%s2135_s2] sm:$0xf] }
  0x31   :  { %193 = vmatmul.mubr.f32.gmra.mrb[6].mxu0 %v23_v37  ;;  %v1208_v46 = vpack.c.bf16 %v795_v43, %v794_v42 }
  0x32   :  { %282 = vmatmul.mubr.f32.gmra.mrb[6].mxu1 %v23_v37  ;;  %1157 = vmatpush3.bf16.msra.mxu0 %v1156_v45  ;;  %v811_v37 = vld [vmem:[%s2134_s3 + $0x1d8] sm:$0xff]  ;;  %v781_v45 = vld [vmem:[%s2134_s3 + $0xe8] sm:$0xff] }
  0x33   :  { %1159 = vmatprep.subr.bf16.mxu0 %v1158_v52  ;;  %1201 = vmatpush3.bf16.msra.mxu1 %v1200_v21  ;;  %v1206_v39 = vpack.c.bf16 %v811_v37, %v810_v36  ;;  %v1178_v47 = vpack.c.bf16 %v781_v45, %v780_v44  ;;  %v765_v52 = vld [vmem:[%s2134_s3 + $0x68] sm:$0xff] }
  0x34   :  { %1203 = vmatprep.subr.bf16.mxu1 %v1202_v29  ;;  %v1180_v58 = vpack.c.bf16 %v765_v52, %v764_v50 }
  0x36   :  { %1161 = vmatpush3.bf16.msra.mxu0 %v1160_v57  ;;  %v814_v57 = vld [vmem:[%s2134_s3 + $0x1f0] sm:$0xff] }
  0x37   :  { %1163 = vmatprep.subr.bf16.mxu0 %v1162_v0  ;;  %1205 = vmatpush3.bf16.msra.mxu1 %v1204_v34  ;;  %v1214_v0 = vpack.c.bf16 %v815_v59, %v814_v57 }
  0x38   :  { %1207 = vmatprep.subr.bf16.mxu1 %v1206_v39 }
  0x3a   :  { %1165 = vmatpush3.bf16.msra.mxu0 %v1164_v6  ;;  %v90_v6 = vlaneseq }
  0x3b   :  { %1167 = vmatprep.subr.bf16.mxu0 %v1166_v13  ;;  %1209 = vmatpush3.bf16.msra.mxu1 %v1208_v46 }
  0x3c   :  { %1211 = vmatprep.subr.bf16.mxu1 %v1210_v51  ;;  %v91_v7 = vshrl.u32 %v90_v6, 7 }
  0x3e   :  { %1169 = vmatpush3.bf16.msra.mxu0 %v1168_v18  ;;  %v92_v8 = vsub.s32 0, %v91_v7  ;;  %v100_v10 = vsub.s32 2, %v91_v7  ;;  %v96_v11 = vsub.s32 1, %v91_v7  ;;  %v104_v12 = vsub.s32 3, %v91_v7 }
  0x3f   :  { %1171 = vmatprep.subr.bf16.mxu0 %v1170_v25  ;;  %1213 = vmatpush3.bf16.msra.mxu1 %v1212_v60 }
  0x40   :  { %1215 = vmatprep.subr.bf16.mxu1 %v1214_v0  ;;  %v1721_v13 = vrot.slane %v88_v9, %v92_v8  ;;  %v1723_v14 = vrot.slane %v88_v9, %v100_v10  ;;  %v1725_v15 = vrot.slane %v88_v9, %v96_v11  ;;  %v1727_v16 = vrot.slane %v88_v9, %v104_v12 }
  0x42   :  { %1173 = vmatpush3.bf16.msra.mxu0 %v1172_v30 }
  0x43   :  { %1175 = vmatprep.subr.bf16.mxu0 %v1174_v38  ;;  %1217 = vmatpush3.bf16.msra.mxu1 %v1216_v5 }
  0x46   :  { %1177 = vmatpush3.bf16.msra.mxu0 %v1176_v3 }
  0x47   :  { %1179 = vmatprep.subr.bf16.mxu0 %v1178_v47 }
  0x4a   :  { %1181 = vmatpush3.bf16.msra.mxu0 %v1180_v58 }
  0x4b   :  { %1183 = vmatprep.subr.bf16.mxu0 %v1182_v61 }
  0x4e   :  { %1185 = vmatpush3.bf16.msra.mxu0 %v1184_v4 }
  0xf8   :  { %v176_v17 = vpop.f32.mrb[0].mxu0 }
  0xf9   :  { %v177_v18 = vadd.f32 %v176_v17, %v1721_v13  ;;  %v265_v19 = vpop.f32.mrb[0].mxu1  ;;  %v178_v20 = vpop.f32.mrb[1].mxu0 }
  0xfa   :  { %v266_v21 = vadd.f32 %v265_v19, %v1723_v14  ;;  %v179_v22 = vadd.f32 %v178_v20, %v1725_v15  ;;  %v267_v23 = vpop.f32.mrb[1].mxu1 }
  0xfb   :  { %v1732_v24 = vmul.f32 0.70710677, %v177_v18  ;;  %v268_v25 = vadd.f32 %v267_v23, %v1727_v16  ;;  %v1785_v9 = vmul.f32 0.5, %v177_v18 }
  0xfc   :  { %v1735_v26 = vmul.f32 0.70710677, %v266_v21  ;;  %v1737_v27 = vmul.f32 0.70710677, %v179_v22  ;;  %v182_v36 = vpop.f32.mrb[2].mxu0  ;;  %v1787_v10 = vmul.f32 0.5, %v266_v21 }
  0xfd   :  { %v320_v28 = vand.u32 2147483647, %v1732_v24  ;;  %v1742_v31 = vmul.f32 0.70710677, %v268_v25  ;;  %v271_v37 = vpop.f32.mrb[2].mxu1  ;;  %v184_v41 = vpop.f32.mrb[3].mxu0  ;;  %v183_v44 = vadd.f32 %v182_v36, %v1721_v13 }
  0xfe   :  { %v322_v29 = vand.u32 2147483647, %v1735_v26  ;;  %v321_v30 = vand.u32 2147483647, %v1737_v27  ;;  %v273_v42 = vpop.f32.mrb[3].mxu1  ;;  %v272_v49 = vadd.f32 %v271_v37, %v1723_v14  ;;  %v1756_v50 = vadd.f32 %v184_v41, %v1725_v15 }
  0xff   :  { %v336_v32 = vmul.f32 0.3275911, %v320_v28  ;;  %v576_v38 = vsub.f32 0.0, %v320_v28  ;;  %v323_v40 = vand.u32 2147483647, %v1742_v31  ;;  %v1771_v59 = vadd.f32 %v273_v42, %v1727_v16 }
 0x100   :  { %v338_v33 = vmul.f32 0.3275911, %v322_v29  ;;  %v337_v35 = vmul.f32 0.3275911, %v321_v30  ;;  %v188_v3 = vpop.f32.mrb[4].mxu0  ;;  %v578_v47 = vsub.f32 0.0, %v322_v29 }
 0x101   :  { %v352_v34 = vadd.f32 1.0, %v336_v32  ;;  %v1745_v43 = vpop.f32.mrb[4].mxu1  ;;  %v1748_v45 = vpop.f32.mrb[5].mxu0  ;;  %v592_v53 = vmul.f32 %v576_v38, %v320_v28  ;;  %v339_v54 = vmul.f32 0.3275911, %v323_v40  ;;  %v577_v60 = vsub.f32 0.0, %v321_v30 }
 0x102   :  { %v354_v39 = vadd.f32 1.0, %v338_v33  ;;  %v1750_v46 = vpop.f32.mrb[5].mxu1  ;;  %v1752_v48 = vadd.f32 1.0, %v337_v35  ;;  %v1762_v55 = vmul.f32 0.70710677, %v183_v44  ;;  %v594_v63 = vmul.f32 %v578_v47, %v322_v29 }
 0x103   :  { %1219 = vrcp.f32 %v352_v34  ;;  %v1768_v58 = vmul.f32 0.70710677, %v272_v49  ;;  %v1775_v62 = vmul.f32 0.70710677, %v1756_v50  ;;  %v608_v1 = vmul.f32 1.442695, %v592_v53 }
 0x104   :  { %1221 = vrcp.f32 %v354_v39  ;;  %v1758_v51 = vpop.f32.mrb[6].mxu0  ;;  %v324_v61 = vand.u32 2147483647, %v1762_v55  ;;  %v1779_v2 = vadd.f32 1.0, %v339_v54  ;;  %v579_v4 = vsub.f32 0.0, %v323_v40 }
 0x105   :  { %v1760_v52 = vpop.f32.mrb[6].mxu1  ;;  %v1764_v56 = vpop.f32.mrb[7].mxu0  ;;  %1223 = vrcp.f32 %v1752_v48  ;;  %v326_v0 = vand.u32 2147483647, %v1768_v58  ;;  %v325_v7 = vand.u32 2147483647, %v1775_v62  ;;  %v593_v11 = vmul.f32 %v577_v60, %v321_v30 }
 0x106   :  { %v1766_v57 = vpop.f32.mrb[7].mxu1  ;;  %v340_v5 = vmul.f32 0.3275911, %v324_v61  ;;  %v1783_v8 = vmul.f32 0.70710677, %v1771_v59  ;;  %v1791_v20 = vmul.f32 0.5, %v179_v22  ;;  %1225 = vpow2.f32 %v608_v1 }
 0x107   :  { %v342_v6 = vmul.f32 0.3275911, %v326_v0  ;;  %v612_v19 = vmul.f32 1.442695, %v594_v63  ;;  %v1793_v23 = vmul.f32 0.5, %v268_v25  ;;  %v580_v28 = vsub.f32 0.0, %v324_v61 }
 0x108   :  { %v1789_v12 = vadd.f32 1.0, %v340_v5  ;;  %v595_v33 = vmul.f32 %v579_v4, %v323_v40  ;;  %1227 = vrcp.f32 %v1779_v2  ;;  %v341_v21 = vmul.f32 0.3275911, %v325_v7 }
 0x109   :  { %v1795_v35 = vadd.f32 1.0, %v342_v6  ;;  %v327_v30 = vand.u32 2147483647, %v1783_v8  ;;  %v610_v37 = vmul.f32 1.442695, %v593_v11  ;;  %v582_v22 = vsub.f32 0.0, %v326_v0 }
 0x10a   :  { %1229 = vrcp.f32 %v1789_v12  ;;  %v596_v38 = vmul.f32 %v580_v28, %v324_v61  ;;  %v614_v41 = vmul.f32 1.442695, %v595_v33  ;;  %v1808_v53 = vmul.f32 0.5, %v183_v44 }
 0x10b   :  { %1231 = vpow2.f32 %v612_v19  ;;  %v1810_v54 = vadd.f32 1.0, %v341_v21  ;;  %v343_v60 = vmul.f32 0.3275911, %v327_v30  ;;  %v1813_v61 = vmul.f32 0.5, %v272_v49 }
 0x10c   :  { %1233 = vrcp.f32 %v1795_v35  ;;  %2154 = vst [vmem:[#allocation3_spill] sm:$0xff] %v1808_v53  ;;  %v616_v4 = vmul.f32 1.442695, %v596_v38  ;;  %v1821_v6 = vadd.f32 %v1745_v43, %v1723_v14  ;;  %v583_v19 = vsub.f32 0.0, %v327_v30 }
 0x10d   :  { %v1220_v17 = vpop.eup %1219  ;;  %1235 = vpow2.f32 %v610_v37  ;;  %2155 = vst [vmem:[#allocation4_spill] sm:$0xff] %v1813_v61  ;;  %v1825_v49 = vadd.f32 1.0, %v343_v60  ;;  %v1832_v43 = vmul.f32 0.5, %v1756_v50  ;;  %vm672_vm0 = vcmp.ge.f32.partialorder %v1732_v24, 0.0 }
 0x10e   :  { %v1222_v29 = vpop.eup %1221  ;;  %v384_v32 = vmul.f32 %v1220_v17, %v352_v34  ;;  %v1801_v34 = vadd.f32 %v188_v3, %v1721_v13  ;;  %v598_v3 = vmul.f32 %v582_v22, %v326_v0  ;;  %2157 = vst [vmem:[#allocation6_spill] sm:$0xff] %v1821_v6  ;;  %1237 = vrcp.f32 %v1810_v54 }
 0x10f   :  { %v386_v18 = vmul.f32 %v1222_v29, %v354_v39  ;;  %v581_v39 = vsub.f32 0.0, %v325_v7  ;;  %v1224_v42 = vpop.eup %1223  ;;  %1239 = vpow2.f32 %v614_v41  ;;  %v1835_v33 = vmul.f32 0.70710677, %v1821_v6 }
 0x110   :  { %v400_v36 = vsub.f32 2.0, %v384_v32  ;;  %2153 = vst [vmem:[#allocation2_spill] sm:$0xff] %v1801_v34  ;;  %v1817_v5 = vmul.f32 0.70710677, %v1801_v34  ;;  %v385_v11 = vmul.f32 %v1224_v42, %v1752_v48  ;;  %1241 = vpow2.f32 %v616_v4 }
 0x111   :  { %v402_v25 = vsub.f32 2.0, %v386_v18  ;;  %2158 = vst [vmem:[#allocation7_spill] sm:$0xff] %v1835_v33  ;;  %v620_v18 = vmul.f32 1.442695, %v598_v3  ;;  %v330_v38 = vand.u32 2147483647, %v1835_v33  ;;  %1243 = vrcp.f32 %v1825_v49 }
 0x112   :  { %v1803_v40 = vmul.f32 %v1220_v17, %v400_v36  ;;  %2156 = vst [vmem:[#allocation5_spill] sm:$0xff] %v1817_v5  ;;  %v597_v17 = vmul.f32 %v581_v39, %v325_v7  ;;  %v328_v0 = vand.u32 2147483647, %v1817_v5  ;;  %v401_v60 = vsub.f32 2.0, %v385_v11 }
 0x113   :  { %v1806_v47 = vmul.f32 %v1222_v29, %v402_v25  ;;  %v1828_v29 = vpop.eup %1225  ;;  %v599_v25 = vmul.f32 %v583_v19, %v327_v30  ;;  %v346_v3 = vmul.f32 0.3275911, %v330_v38  ;;  %1245 = vpow2.f32 %v620_v18 }
 0x114   :  { %v432_v63 = vmul.f32 1.0614054, %v1803_v40  ;;  %v1228_v48 = vpop.eup %1227  ;;  %v344_v21 = vmul.f32 0.3275911, %v328_v0  ;;  %v618_v22 = vmul.f32 1.442695, %v597_v17 }
 0x115   :  { %v434_v1 = vmul.f32 1.0614054, %v1806_v47  ;;  %v1230_v36 = vpop.eup %1229  ;;  %v387_v4 = vmul.f32 %v1228_v48, %v1779_v2  ;;  %v1851_v11 = vmul.f32 0.5, %v1771_v59  ;;  %v1856_v2 = vadd.f32 1.0, %v346_v3 }
 0x116   :  { %v448_v44 = vadd.f32 -1.4531521, %v432_v63  ;;  %v1232_v39 = vpop.eup %1231  ;;  %v1840_v50 = vadd.f32 1.0, %v344_v21  ;;  %v388_v17 = vmul.f32 %v1230_v36, %v1789_v12  ;;  %v584_v21 = vsub.f32 0.0, %v328_v0 }
 0x117   :  { %v450_v28 = vadd.f32 -1.4531521, %v434_v1  ;;  %v1234_v63 = vpop.eup %1233  ;;  %v1860_v12 = vmul.f32 %v1224_v42, %v401_v60  ;;  %v403_v18 = vsub.f32 2.0, %v387_v4  ;;  %v586_v3 = vsub.f32 0.0, %v330_v38 }
 0x118   :  { %v464_v32 = vmul.f32 %v448_v44, %v1803_v40  ;;  %v1846_v44 = vadd.f32 %v1748_v45, %v1725_v15  ;;  %v1853_v19 = vpop.eup %1235  ;;  %1247 = vrcp.f32 %v1840_v50  ;;  %v390_v45 = vmul.f32 %v1234_v63, %v1795_v35 }
 0x119   :  { %v466_v7 = vmul.f32 %v450_v28, %v1806_v47  ;;  %1249 = vpow2.f32 %v618_v22  ;;  %v1872_v42 = vadd.f32 %v1750_v46, %v1727_v16  ;;  %vm674_vm1 = vcmp.ge.f32.partialorder %v1735_v26, 0.0 }
 0x11a   :  { %v480_v37 = vadd.f32 1.4214138, %v464_v32  ;;  %v622_v32 = vmul.f32 1.442695, %v599_v25  ;;  %v1863_v59 = vmul.f32 0.70710677, %v1846_v44  ;;  %1251 = vrcp.f32 %v1856_v2 }
 0x11b   :  { %v482_v41 = vadd.f32 1.4214138, %v466_v7  ;;  %vm673_vm2 = vcmp.ge.f32.partialorder %v1737_v27, 0.0  ;;  %vm675_vm3 = vcmp.ge.f32.partialorder %v1742_v31, 0.0  ;;  %vm677_vm4 = vcmp.ge.f32.partialorder %v1775_v62, 0.0 }
 0x11c   :  { %v496_v1 = vmul.f32 %v480_v37, %v1803_v40  ;;  %1253 = vpow2.f32 %v622_v32  ;;  %v329_v22 = vand.u32 2147483647, %v1863_v59  ;;  %v1883_v32 = vmul.f32 %v1228_v48, %v403_v18 }
 0x11d   :  { %v498_v30 = vmul.f32 %v482_v41, %v1806_v47  ;;  %v1238_v41 = vpop.eup %1237  ;;  %vm676_vm5 = vcmp.ge.f32.partialorder %v1762_v55, 0.0  ;;  %vm679_vm6 = vcmp.ge.f32.partialorder %v1783_v8, 0.0  ;;  %vm678_vm7 = vcmp.ge.f32.partialorder %v1768_v58, 0.0 }
 0x11e   :  { %v512_v28 = vadd.f32 -0.28449672, %v496_v1  ;;  %v404_v1 = vsub.f32 2.0, %v388_v17  ;;  %v600_v17 = vmul.f32 %v584_v21, %v328_v0  ;;  %v389_v46 = vmul.f32 %v1238_v41, %v1810_v54 }
 0x11f   :  { %v514_v7 = vadd.f32 -0.28449672, %v498_v30  ;;  %v1867_v30 = vpop.eup %1239  ;;  %v345_v6 = vmul.f32 0.3275911, %v329_v22  ;;  %v1890_v0 = vmul.f32 0.70710677, %v1872_v42 }
 0x120   :  { %v528_v37 = vmul.f32 %v512_v28, %v1803_v40  ;;  %v1874_v60 = vpop.eup %1241  ;;  %v406_v28 = vsub.f32 2.0, %v390_v45  ;;  %v1887_v5 = vmul.f32 %v1230_v36, %v404_v1  ;;  %v602_v45 = vmul.f32 %v586_v3, %v330_v38 }
 0x121   :  { %v530_v25 = vmul.f32 %v514_v7, %v1806_v47  ;;  %v1879_v7 = vadd.f32 %v1758_v51, %v1721_v13  ;;  %v1244_v33 = vpop.eup %1243  ;;  %2160 = vst [vmem:[#allocation9_spill] sm:$0xff] %v1890_v0  ;;  %v361_v51 = vadd.f32 1.0, %v345_v6  ;;  %v405_v1 = vsub.f32 2.0, %v389_v46 }
 0x122   :  { %v544_v35 = vadd.f32 0.2548296, %v528_v37  ;;  %v1896_v48 = vpop.eup %1245  ;;  %v1898_v18 = vmul.f32 %v1234_v63, %v406_v28  ;;  %v391_v3 = vmul.f32 %v1244_v33, %v1825_v49  ;;  %v1907_v63 = vadd.f32 %v1760_v52, %v1723_v14 }
 0x123   :  { %v546_v4 = vadd.f32 0.2548296, %v530_v25  ;;  %2159 = vst [vmem:[#allocation8_spill] sm:$0xff] %v1879_v7  ;;  %v1894_v21 = vmul.f32 0.70710677, %v1879_v7  ;;  %v1248_v36 = vpop.eup %1247  ;;  %1255 = vrcp.f32 %v361_v51  ;;  %v1919_v14 = vmul.f32 0.5, %v1846_v44 }
 0x124   :  { %v560_v37 = vmul.f32 %v544_v35, %v1803_v40  ;;  %v585_v40 = vsub.f32 0.0, %v329_v22  ;;  %v624_v25 = vmul.f32 1.442695, %v600_v17  ;;  %2162 = vst [vmem:[#allocation11_spill] sm:$0xff] %v1907_v63  ;;  %v392_v46 = vmul.f32 %v1248_v36, %v1840_v50 }
 0x125   :  { %v562_v34 = vmul.f32 %v546_v4, %v1806_v47  ;;  %2161 = vst [vmem:[#allocation10_spill] sm:$0xff] %v1894_v21  ;;  %v331_v47 = vand.u32 2147483647, %v1890_v0  ;;  %v407_v61 = vsub.f32 2.0, %v391_v3  ;;  %v1928_v44 = vmul.f32 0.5, %v1872_v42 }
 0x126   :  { %v640_v13 = vmul.f32 %v1828_v29, %v560_v37  ;;  %v1902_v29 = vpop.eup %1249  ;;  %v332_v37 = vand.u32 2147483647, %v1894_v21  ;;  %1257 = vpow2.f32 %v624_v25  ;;  %v408_v24 = vsub.f32 2.0, %v392_v46 }
 0x127   :  { %v642_v54 = vmul.f32 %v1232_v39, %v562_v34  ;;  %v347_v35 = vmul.f32 0.3275911, %v331_v47  ;;  %v587_v4 = vsub.f32 0.0, %v331_v47  ;;  %v628_v34 = vmul.f32 1.442695, %v602_v45  ;;  %v1252_v28 = vpop.eup %1251 }
 0x128   :  { %v656_v38 = vsub.f32 1.0, %v640_v13  ;;  %v601_v39 = vmul.f32 %v585_v40, %v329_v22  ;;  %v348_v13 = vmul.f32 0.3275911, %v332_v37  ;;  %v1910_v0 = vpop.eup %1253  ;;  %v1916_v45 = vmul.f32 %v1238_v41, %v405_v1 }
 0x129   :  { %v658_v6 = vsub.f32 1.0, %v642_v54  ;;  %v363_v49 = vadd.f32 1.0, %v347_v35  ;;  %v603_v21 = vmul.f32 %v587_v4, %v331_v47  ;;  %v394_v52 = vmul.f32 %v1252_v28, %v1856_v2 }
 0x12a   :  { %v688_v7 = vsub.f32 0.0, %v656_v38  ;;  %v626_v50 = vmul.f32 1.442695, %v601_v39  ;;  %v364_v40 = vadd.f32 1.0, %v348_v13  ;;  %v588_v35 = vsub.f32 0.0, %v332_v37 }
 0x12b   :  { %v690_v17 = vsub.f32 0.0, %v658_v6  ;;  %1259 = vrcp.f32 %v363_v49  ;;  %v1925_v26 = vmul.f32 %v1244_v33, %v407_v61  ;;  %v630_v41 = vmul.f32 1.442695, %v603_v21 }
 0x12c   :  { %v704_v54 = vsel %vm672_vm0, %v656_v38, %v688_v7  ;;  %1261 = vpow2.f32 %v628_v34  ;;  %v1923_v7 = vmul.f32 0.70710677, %v1907_v63  ;;  %v1933_v2 = vadd.f32 %v1764_v56, %v1725_v15 }
 0x12d   :  { %v706_v22 = vsel %vm674_vm1, %v658_v6, %v690_v17  ;;  %v720_v53 = vadd.f32 1.0, %v704_v54  ;;  %1263 = vrcp.f32 %v364_v40  ;;  %v1937_v38 = vadd.f32 %v1766_v57, %v1727_v16  ;;  %v1256_v1 = vpop.eup %1255 }
 0x12e   :  { %2163 = vst [vmem:[#allocation12_spill] sm:$0xff] %v1923_v7  ;;  %v722_v25 = vadd.f32 1.0, %v706_v22  ;;  %v334_v47 = vand.u32 2147483647, %v1923_v7  ;;  %2164 = vst [vmem:[#allocation13_spill] sm:$0xff] %v1933_v2  ;;  %v410_v3 = vsub.f32 2.0, %v394_v52  ;;  %1265 = vpow2.f32 %v626_v50 }
 0x12f   :  { %2165 = vst [vmem:[#allocation14_spill] sm:$0xff] %v1937_v38  ;;  %v604_v61 = vmul.f32 %v588_v35, %v332_v37  ;;  %v433_v33 = vmul.f32 1.0614054, %v1860_v12  ;;  %v1941_v21 = vmul.f32 %v720_v53, %v1785_v9  ;;  %v1943_v42 = vmul.f32 %v1248_v36, %v408_v24 }
 0x130   :  { %v393_v6 = vmul.f32 %v1256_v1, %v361_v51  ;;  %v350_v4 = vmul.f32 0.3275911, %v334_v47  ;;  %v1946_v15 = vmul.f32 %v722_v25, %v1787_v10  ;;  %1267 = vpow2.f32 %v630_v41  ;;  %v1955_v53 = vpop.eup %1257 }
 0x131   :  { %v1949_v16 = vmul.f32 0.70710677, %v1933_v2  ;;  %v1952_v56 = vmul.f32 0.70710677, %v1937_v38  ;;  %v590_v37 = vsub.f32 0.0, %v334_v47  ;;  %v1957_v36 = vmul.f32 %v1252_v28, %v410_v3 }
 0x132   :  { %v366_v57 = vadd.f32 1.0, %v350_v4  ;;  %v449_v34 = vadd.f32 -1.4531521, %v433_v33  ;;  %v435_v9 = vmul.f32 1.0614054, %v1883_v32  ;;  %v409_v46 = vsub.f32 2.0, %v393_v6 }
 0x133   :  { %2166 = vst [vmem:[#allocation15_spill] sm:$0xff] %v1949_v16  ;;  %2167 = vst [vmem:[#allocation16_spill] sm:$0xff] %v1952_v56  ;;  %v1959_v51 = vmul.f32 1.442695, %v604_v61  ;;  %v333_v10 = vand.u32 2147483647, %v1949_v16  ;;  %v606_v28 = vmul.f32 %v590_v37, %v334_v47 }
 0x134   :  { %v335_v39 = vand.u32 2147483647, %v1952_v56  ;;  %1269 = vrcp.f32 %v366_v57  ;;  %v465_v13 = vmul.f32 %v449_v34, %v1860_v12  ;;  %v437_v54 = vmul.f32 1.0614054, %v1916_v45 }
 0x135   :  { %v1260_v17 = vpop.eup %1259  ;;  %v349_v52 = vmul.f32 0.3275911, %v333_v10  ;;  %v589_v50 = vsub.f32 0.0, %v333_v10  ;;  %v451_v3 = vadd.f32 -1.4531521, %v435_v9  ;;  %v1971_v2 = vmul.f32 %v1256_v1, %v409_v46 }
 0x136   :  { %v395_v22 = vmul.f32 %v1260_v17, %v363_v49  ;;  %v351_v35 = vmul.f32 0.3275911, %v335_v39  ;;  %v1965_v24 = vpop.eup %1261  ;;  %v591_v25 = vsub.f32 0.0, %v335_v39  ;;  %v481_v41 = vadd.f32 1.4214138, %v465_v13 }
 0x137   :  { %v1264_v61 = vpop.eup %1263  ;;  %v365_v4 = vadd.f32 1.0, %v349_v52  ;;  %v605_v63 = vmul.f32 %v589_v50, %v333_v10  ;;  %v467_v49 = vmul.f32 %v451_v3, %v1883_v32  ;;  %v453_v37 = vadd.f32 -1.4531521, %v437_v54 }
 0x138   :  { %v411_v33 = vsub.f32 2.0, %v395_v22  ;;  %v367_v6 = vadd.f32 1.0, %v351_v35  ;;  %v396_v7 = vmul.f32 %v1264_v61, %v364_v40  ;;  %v607_v38 = vmul.f32 %v591_v25, %v335_v39  ;;  %v1969_v56 = vpop.eup %1265 }
 0x139   :  { %v497_v34 = vmul.f32 %v481_v41, %v1860_v12  ;;  %1271 = vrcp.f32 %v365_v4  ;;  %v634_v47 = vmul.f32 1.442695, %v605_v63  ;;  %v1973_v9 = vmul.f32 1.442695, %v606_v28 }
 0x13a   :  { %v412_v13 = vsub.f32 2.0, %v396_v7  ;;  %1273 = vrcp.f32 %v367_v6  ;;  %v1975_v10 = vpop.eup %1267  ;;  %v1977_v40 = vmul.f32 %v1260_v17, %v411_v33  ;;  %v483_v39 = vadd.f32 1.4214138, %v467_v49 }
 0x13b   :  { %v513_v22 = vadd.f32 -0.28449672, %v497_v34  ;;  %v469_v52 = vmul.f32 %v453_v37, %v1916_v45  ;;  %v439_v50 = vmul.f32 1.0614054, %v1925_v26  ;;  %1275 = vpow2.f32 %v634_v47 }
 0x13c   :  { %v1981_v1 = vmul.f32 1.442695, %v607_v38  ;;  %v436_v7 = vmul.f32 1.0614054, %v1887_v5  ;;  %v499_v46 = vmul.f32 %v483_v39, %v1883_v32  ;;  %v438_v28 = vmul.f32 1.0614054, %v1898_v18 }
 0x13d   :  { %v529_v63 = vmul.f32 %v513_v22, %v1860_v12  ;;  %v485_v54 = vadd.f32 1.4214138, %v469_v52  ;;  %v455_v35 = vadd.f32 -1.4531521, %v439_v50  ;;  %v1987_v25 = vmul.f32 %v1264_v61, %v412_v13 }
 0x13e   :  { %v1270_v17 = vpop.eup %1269  ;;  %v452_v3 = vadd.f32 -1.4531521, %v436_v7  ;;  %v441_v33 = vmul.f32 1.0614054, %v1971_v2  ;;  %v515_v34 = vadd.f32 -0.28449672, %v499_v46  ;;  %1277 = vpow2.f32 %v1981_v1 }
 0x13f   :  { %v545_v41 = vadd.f32 0.2548296, %v529_v63  ;;  %v398_v38 = vmul.f32 %v1270_v17, %v366_v57  ;;  %v501_v49 = vmul.f32 %v485_v54, %v1916_v45  ;;  %v471_v47 = vmul.f32 %v455_v35, %v1925_v26 }
 0x140   :  { %v468_v22 = vmul.f32 %v452_v3, %v1887_v5  ;;  %v454_v39 = vadd.f32 -1.4531521, %v438_v28  ;;  %v457_v52 = vadd.f32 -1.4531521, %v441_v33  ;;  %v531_v13 = vmul.f32 %v515_v34, %v1883_v32 }
 0x141   :  { %v561_v37 = vmul.f32 %v545_v41, %v1860_v12  ;;  %v414_v61 = vsub.f32 2.0, %v398_v38  ;;  %v517_v50 = vadd.f32 -0.28449672, %v501_v49  ;;  %v487_v63 = vadd.f32 1.4214138, %v471_v47 }
 0x142   :  { %v484_v16 = vadd.f32 1.4214138, %v468_v22  ;;  %v470_v57 = vmul.f32 %v454_v39, %v1898_v18  ;;  %v473_v46 = vmul.f32 %v457_v52, %v1971_v2  ;;  %v547_v12 = vadd.f32 0.2548296, %v531_v13 }
 0x143   :  { %v641_v7 = vmul.f32 %v1853_v19, %v561_v37  ;;  %v1272_v54 = vpop.eup %1271  ;;  %v1999_v35 = vmul.f32 %v1270_v17, %v414_v61  ;;  %v533_v41 = vmul.f32 %v517_v50, %v1916_v45  ;;  %v503_v28 = vmul.f32 %v487_v63, %v1925_v26 }
 0x144   :  { %v1274_v3 = vpop.eup %1273  ;;  %v397_v33 = vmul.f32 %v1272_v54, %v365_v4  ;;  %v500_v19 = vmul.f32 %v484_v16, %v1887_v5  ;;  %v486_v34 = vadd.f32 1.4214138, %v470_v57  ;;  %v563_v47 = vmul.f32 %v547_v12, %v1883_v32 }
 0x145   :  { %v657_v38 = vsub.f32 1.0, %v641_v7  ;;  %v399_v49 = vmul.f32 %v1274_v3, %v367_v6  ;;  %v549_v37 = vadd.f32 0.2548296, %v533_v41  ;;  %v519_v22 = vadd.f32 -0.28449672, %v503_v28  ;;  %v2006_v17 = vpop.eup %1275 }
 0x146   :  { %v413_v39 = vsub.f32 2.0, %v397_v33  ;;  %v516_v61 = vadd.f32 -0.28449672, %v500_v19  ;;  %v502_v13 = vmul.f32 %v486_v34, %v1898_v18  ;;  %v643_v4 = vmul.f32 %v1867_v30, %v563_v47 }
 0x147   :  { %v689_v52 = vsub.f32 0.0, %v657_v38  ;;  %v415_v50 = vsub.f32 2.0, %v399_v49  ;;  %v565_v16 = vmul.f32 %v549_v37, %v1916_v45  ;;  %v535_v6 = vmul.f32 %v519_v22, %v1925_v26 }
 0x148   :  { %v2013_v63 = vmul.f32 %v1272_v54, %v413_v39  ;;  %v532_v7 = vmul.f32 %v516_v61, %v1887_v5  ;;  %v518_v57 = vadd.f32 -0.28449672, %v502_v13  ;;  %v659_v28 = vsub.f32 1.0, %v643_v4 }
 0x149   :  { %v705_v32 = vsel %vm673_vm2, %v657_v38, %v689_v52  ;;  %v2018_v12 = vmul.f32 %v1274_v3, %v415_v50  ;;  %v645_v33 = vmul.f32 %v1902_v29, %v565_v16  ;;  %v551_v19 = vadd.f32 0.2548296, %v535_v6 }
 0x14a   :  { %v721_v41 = vadd.f32 1.0, %v705_v32  ;;  %v548_v30 = vadd.f32 0.2548296, %v532_v7  ;;  %v534_v45 = vmul.f32 %v518_v57, %v1898_v18  ;;  %v489_v34 = vadd.f32 1.4214138, %v473_v46 }
 0x14b   :  { %v691_v54 = vsub.f32 0.0, %v659_v28  ;;  %v661_v38 = vsub.f32 1.0, %v645_v33  ;;  %v443_v3 = vmul.f32 1.0614054, %v1977_v40  ;;  %v567_v49 = vmul.f32 %v551_v19, %v1925_v26 }
 0x14c   :  { %v737_v27 = vmul.f32 %v721_v41, %v1791_v20  ;;  %v564_v47 = vmul.f32 %v548_v30, %v1887_v5  ;;  %v550_v29 = vadd.f32 0.2548296, %v534_v45  ;;  %v505_v37 = vmul.f32 %v489_v34, %v1971_v2 }
 0x14d   :  { %v707_v46 = vsel %vm675_vm3, %v659_v28, %v691_v54  ;;  %v693_v22 = vsub.f32 0.0, %v661_v38  ;;  %v459_v39 = vadd.f32 -1.4531521, %v443_v3  ;;  %v440_v52 = vmul.f32 1.0614054, %v1943_v42 }
 0x14e   :  { %887 = vmatprep.mubr.f32.mxu0 %v737_v27  ;;  %v723_v20 = vadd.f32 1.0, %v707_v46  ;;  %v647_v26 = vmul.f32 %v1910_v0, %v567_v49  ;;  %v644_v5 = vmul.f32 %v1874_v60, %v564_v47  ;;  %v566_v61 = vmul.f32 %v550_v29, %v1898_v18 }
 0x14f   :  { %888 = vmatmul.mubr.f32.vlgmr.msra.gmra.mrb[8].mxu0 %v1941_v21  ;;  %v709_v13 = vsel %vm677_vm4, %v661_v38, %v693_v22  ;;  %v521_v31 = vadd.f32 -0.28449672, %v505_v37  ;;  %v475_v50 = vmul.f32 %v459_v39, %v1977_v40  ;;  %v456_v4 = vadd.f32 -1.4531521, %v440_v52  ;;  %v2168_v37 = vld [vmem:[#allocation3_spill] sm:$0xff] }
 0x150   :  { %v739_v16 = vmul.f32 %v723_v20, %v1793_v23  ;;  %v725_v6 = vadd.f32 1.0, %v709_v13  ;;  %v663_v32 = vsub.f32 1.0, %v647_v26  ;;  %v660_v7 = vsub.f32 1.0, %v644_v5  ;;  %v2169_v13 = vld [vmem:[#allocation4_spill] sm:$0xff] }
 0x151   :  { %v646_v21 = vmul.f32 %v1896_v48, %v566_v61  ;;  %v537_v0 = vmul.f32 %v521_v31, %v1971_v2  ;;  %v491_v57 = vadd.f32 1.4214138, %v475_v50  ;;  %v472_v60 = vmul.f32 %v456_v4, %v1943_v42  ;;  %v2170_v4 = vld [vmem:[#allocation9_spill] sm:$0xff] }
 0x152   :  { %972 = vmatprep.mubr.f32.mxu1 %v739_v16  ;;  %v741_v62 = vmul.f32 %v725_v6, %v1832_v43  ;;  %v695_v18 = vsub.f32 0.0, %v663_v32  ;;  %v692_v41 = vsub.f32 0.0, %v660_v7  ;;  %v442_v28 = vmul.f32 1.0614054, %v1957_v36 }
 0x153   :  { %973 = vmatmul.mubr.f32.vlgmr.msra.gmra.mrb[8].mxu1 %v1946_v15  ;;  %v662_v23 = vsub.f32 1.0, %v646_v21  ;;  %v553_v33 = vadd.f32 0.2548296, %v537_v0  ;;  %v507_v19 = vmul.f32 %v491_v57, %v1977_v40  ;;  %v488_v30 = vadd.f32 1.4214138, %v472_v60  ;;  %v2171_v60 = vld [vmem:[#allocation5_spill] sm:$0xff] }
 0x154   :  { %vm681_vm8 = vcmp.ge.f32.partialorder %v1863_v59, 0.0  ;;  %892 = vmatprep.mubr.f32.mxu0 %v741_v62  ;;  %v711_v48 = vsel %vm679_vm6, %v663_v32, %v695_v18  ;;  %v708_v43 = vsel %vm676_vm5, %v660_v7, %v692_v41  ;;  %v458_v45 = vadd.f32 -1.4531521, %v442_v28 }
 0x155   :  { %v445_v34 = vmul.f32 1.0614054, %v2013_v63  ;;  %v727_v27 = vadd.f32 1.0, %v711_v48  ;;  %v724_v54 = vadd.f32 1.0, %v708_v43  ;;  %v694_v15 = vsub.f32 0.0, %v662_v23 }
 0x156   :  { %v569_v38 = vmul.f32 %v553_v33, %v1971_v2  ;;  %v523_v3 = vadd.f32 -0.28449672, %v507_v19  ;;  %v504_v49 = vmul.f32 %v488_v30, %v1943_v42  ;;  %v474_v47 = vmul.f32 %v458_v45, %v1957_v36 }
 0x157   :  { %v461_v29 = vadd.f32 -1.4531521, %v445_v34  ;;  %v743_v8 = vmul.f32 %v727_v27, %v1851_v11  ;;  %v740_v46 = vmul.f32 %v724_v54, %v2168_v37  ;;  %v710_v55 = vsel %vm678_vm7, %v662_v23, %v694_v15 }
 0x158   :  { %v649_v22 = vmul.f32 %v1969_v56, %v569_v38  ;;  %v726_v39 = vadd.f32 1.0, %v710_v55  ;;  %v539_v52 = vmul.f32 %v523_v3, %v1977_v40  ;;  %v520_v20 = vadd.f32 -0.28449672, %v504_v49  ;;  %v1278_v55 = vpop.eup %1277 }
 0x159   :  { %v490_v2 = vadd.f32 1.4214138, %v474_v47  ;;  %977 = vmatprep.mubr.f32.mxu1 %v743_v8  ;;  %893 = vmatmul.mubr.f32.gmra.mrb[10].mxu0 %v740_v46  ;;  %v477_v5 = vmul.f32 %v461_v29, %v2013_v63  ;;  %v447_v61 = vmul.f32 1.0614054, %v2018_v12  ;;  %v444_v11 = vmul.f32 1.0614054, %v1987_v25 }
 0x15a   :  { %v665_v26 = vsub.f32 1.0, %v649_v22  ;;  %v742_v31 = vmul.f32 %v726_v39, %v2169_v13  ;;  %v555_v58 = vadd.f32 0.2548296, %v539_v52  ;;  %v536_v50 = vmul.f32 %v520_v20, %v1943_v42  ;;  %v2172_v52 = vld [vmem:[#allocation2_spill] sm:$0xff] }
 0x15b   :  { %v506_v56 = vmul.f32 %v490_v2, %v1957_v36  ;;  %vm683_vm9 = vcmp.ge.f32.partialorder %v2170_v4, 0.0  ;;  %v493_v6 = vadd.f32 1.4214138, %v477_v5  ;;  %v463_v32 = vadd.f32 -1.4531521, %v447_v61 }
 0x15c   :  { %v697_v16 = vsub.f32 0.0, %v665_v26  ;;  %978 = vmatmul.mubr.f32.gmra.mrb[10].mxu1 %v742_v31  ;;  %v571_v7 = vmul.f32 %v555_v58, %v1977_v40  ;;  %v552_v21 = vadd.f32 0.2548296, %v536_v50  ;;  %v460_v57 = vadd.f32 -1.4531521, %v444_v11  ;;  %v2173_v58 = vld [vmem:[#allocation7_spill] sm:$0xff] }
 0x15d   :  { %v522_v0 = vadd.f32 -0.28449672, %v506_v56  ;;  %vm680_vm10 = vcmp.ge.f32.partialorder %v2171_v60, 0.0  ;;  %v509_v18 = vmul.f32 %v493_v6, %v2013_v63  ;;  %v479_v41 = vmul.f32 %v463_v32, %v2018_v12  ;;  %v2175_v60 = vld [vmem:[#allocation15_spill] sm:$0xff] }
 0x15e   :  { %v713_v62 = vsel %vm681_vm8, %v665_v26, %v697_v16  ;;  %v446_v1 = vmul.f32 1.0614054, %v1999_v35  ;;  %v651_v23 = vmul.f32 %v1975_v10, %v571_v7  ;;  %v568_v33 = vmul.f32 %v552_v21, %v1943_v42 }
 0x15f   :  { %v729_v28 = vadd.f32 1.0, %v713_v62  ;;  %v538_v40 = vmul.f32 %v522_v0, %v1957_v36  ;;  %v525_v19 = vadd.f32 -0.28449672, %v509_v18  ;;  %v495_v30 = vadd.f32 1.4214138, %v479_v41 }
 0x160   :  { %v476_v48 = vmul.f32 %v460_v57, %v1987_v25  ;;  %v462_v43 = vadd.f32 -1.4531521, %v446_v1  ;;  %v667_v45 = vsub.f32 1.0, %v651_v23  ;;  %v648_v34 = vmul.f32 %v1955_v53, %v568_v33  ;;  %v2176_v23 = vld [vmem:[#allocation13_spill] sm:$0xff] }
 0x161   :  { %v745_v59 = vmul.f32 %v729_v28, %v1919_v14  ;;  %v554_v27 = vadd.f32 0.2548296, %v538_v40  ;;  %v541_v54 = vmul.f32 %v525_v19, %v2013_v63  ;;  %v511_v15 = vmul.f32 %v495_v30, %v2018_v12 }
 0x162   :  { %v492_v10 = vadd.f32 1.4214138, %v476_v48  ;;  %v478_v42 = vmul.f32 %v462_v43, %v1999_v35  ;;  %1279 = vpow2.f32 %v1959_v51  ;;  %v699_v38 = vsub.f32 0.0, %v667_v45  ;;  %v2177_v43 = vld [vmem:[#allocation16_spill] sm:$0xff] }
 0x163   :  { %897 = vmatprep.mubr.f32.mxu0 %v745_v59  ;;  %v664_v3 = vsub.f32 1.0, %v648_v34  ;;  %v570_v49 = vmul.f32 %v554_v27, %v1957_v36  ;;  %v557_v47 = vadd.f32 0.2548296, %v541_v54  ;;  %v527_v14 = vadd.f32 -0.28449672, %v511_v15 }
 0x164   :  { %v508_v29 = vmul.f32 %v492_v10, %v1987_v25  ;;  %v494_v53 = vadd.f32 1.4214138, %v478_v42  ;;  %1281 = vpow2.f32 %v1973_v9  ;;  %v715_v8 = vsel %vm683_vm9, %v667_v45, %v699_v38  ;;  %v2179_v38 = vld [vmem:[#allocation10_spill] sm:$0xff] }
 0x165   :  { %v696_v37 = vsub.f32 0.0, %v664_v3  ;;  %v650_v46 = vmul.f32 %v1965_v24, %v570_v49  ;;  %v731_v51 = vadd.f32 1.0, %v715_v8  ;;  %v573_v22 = vmul.f32 %v557_v47, %v2013_v63 }
 0x166   :  { %v543_v39 = vmul.f32 %v527_v14, %v2018_v12  ;;  %v524_v36 = vadd.f32 -0.28449672, %v508_v29  ;;  %v296_v20 = vmul.f32 0.5, %v2172_v52  ;;  %v510_v9 = vmul.f32 %v494_v53, %v1999_v35  ;;  %v2181_v29 = vld [vmem:[#allocation12_spill] sm:$0xff]  ;;  %v1001_v52 = vld [vmem:[%s2136_s4] ss:$0 sm:$0xff] }
 0x167   :  { %v712_v2 = vsel %vm680_vm10, %v664_v3, %v696_v37  ;;  %v666_v26 = vsub.f32 1.0, %v650_v46  ;;  %v747_v5 = vmul.f32 %v731_v51, %v1928_v44  ;;  %v653_v24 = vmul.f32 %v2006_v17, %v573_v22  ;;  %v2174_v44 = vld [vmem:[#allocation6_spill] sm:$0xff]  ;;  %v2182_v37 = vld [vmem:[#allocation11_spill] sm:$0xff] }
 0x168   :  { %v728_v61 = vadd.f32 1.0, %v712_v2  ;;  %v559_v11 = vadd.f32 0.2548296, %v543_v39  ;;  %v540_v63 = vmul.f32 %v524_v36, %v1987_v25  ;;  %v526_v31 = vadd.f32 -0.28449672, %v510_v9 }
 0x169   :  { %v698_v13 = vsub.f32 0.0, %v666_v26  ;;  %vm682_vm11 = vcmp.ge.f32.partialorder %v2173_v58, 0.0  ;;  %982 = vmatprep.mubr.f32.mxu1 %v747_v5  ;;  %v669_v56 = vsub.f32 1.0, %v653_v24  ;;  %v298_v7 = vmul.f32 0.5, %v2174_v44 }
 0x16a   :  { %v744_v50 = vmul.f32 %v728_v61, %v296_v20  ;;  %v575_v4 = vmul.f32 %v559_v11, %v2018_v12  ;;  %v556_v6 = vadd.f32 0.2548296, %v540_v63  ;;  %v542_v32 = vmul.f32 %v526_v31, %v1999_v35 }
 0x16b   :  { %v714_v16 = vsel %vm682_vm11, %v666_v26, %v698_v13  ;;  %v701_v21 = vsub.f32 0.0, %v669_v56  ;;  %vm685_vm12 = vcmp.ge.f32.partialorder %v2175_v60, 0.0  ;;  %v301_v33 = vmul.f32 0.5, %v2176_v23 }
 0x16c   :  { %898 = vmatmul.mubr.f32.gmra.mrb[12].mxu0 %v744_v50  ;;  %v730_v17 = vadd.f32 1.0, %v714_v16  ;;  %v655_v0 = vmul.f32 %v1278_v55, %v575_v4  ;;  %v1280_v57 = vpop.eup %1279  ;;  %v572_v62 = vmul.f32 %v556_v6, %v1987_v25  ;;  %v558_v18 = vadd.f32 0.2548296, %v542_v32  ;;  %v2178_v25 = vld [vmem:[#allocation14_spill] sm:$0xff] }
 0x16d   :  { %v717_v1 = vsel %vm685_vm12, %v669_v56, %v701_v21  ;;  %vm687_vm13 = vcmp.ge.f32.partialorder %v2177_v43, 0.0  ;;  %v303_v54 = vmul.f32 0.5, %v2178_v25  ;;  %vm684_vm14 = vcmp.ge.f32.partialorder %v2179_v38, 0.0 }
 0x16e   :  { %v746_v41 = vmul.f32 %v730_v17, %v298_v7  ;;  %v671_v28 = vsub.f32 1.0, %v655_v0  ;;  %v1282_v12 = vpop.eup %1281  ;;  %v733_v40 = vadd.f32 1.0, %v717_v1  ;;  %v652_v19 = vmul.f32 %v1280_v57, %v572_v62 }
 0x16f   :  { %v574_v30 = vmul.f32 %v558_v18, %v1999_v35  ;;  %v2180_v35 = vld [vmem:[#allocation8_spill] sm:$0xff]  ;;  %vm686_vm15 = vcmp.ge.f32.partialorder %v2181_v29, 0.0  ;;  %v302_v46 = vmul.f32 0.5, %v2182_v37 }
 0x170   :  { %983 = vmatmul.mubr.f32.gmra.mrb[12].mxu1 %v746_v41  ;;  %v703_v48 = vsub.f32 0.0, %v671_v28  ;;  %v749_v59 = vmul.f32 %v733_v40, %v301_v33  ;;  %v668_v45 = vsub.f32 1.0, %v652_v19  ;;  %v300_v14 = vmul.f32 0.5, %v2180_v35 }
 0x171   :  { %v654_v34 = vmul.f32 %v1282_v12, %v574_v30 }
 0x172   :  { %v719_v27 = vsel %vm687_vm13, %v671_v28, %v703_v48  ;;  %902 = vmatprep.mubr.f32.mxu0 %v749_v59  ;;  %v700_v10 = vsub.f32 0.0, %v668_v45 }
 0x173   :  { %v735_v15 = vadd.f32 1.0, %v719_v27  ;;  %v670_v42 = vsub.f32 1.0, %v654_v34 }
 0x174   :  { %v716_v49 = vsel %vm684_vm14, %v668_v45, %v700_v10 }
 0x175   :  { %v751_v3 = vmul.f32 %v735_v15, %v303_v54  ;;  %v702_v47 = vsub.f32 0.0, %v670_v42  ;;  %v732_v53 = vadd.f32 1.0, %v716_v49 }
 0x177   :  { %987 = vmatprep.mubr.f32.mxu1 %v751_v3  ;;  %v718_v8 = vsel %vm686_vm15, %v670_v42, %v702_v47  ;;  %v748_v55 = vmul.f32 %v732_v53, %v300_v14 }
 0x178   :  { %v734_v51 = vadd.f32 1.0, %v718_v8 }
 0x179   :  { %903 = vmatmul.mubr.f32.gmra.mrb[14].mxu0 %v748_v55 }
 0x17a   :  { %v750_v22 = vmul.f32 %v734_v51, %v302_v46 }
 0x17c   :  { %988 = vmatmul.mubr.f32.gmra.mrb[14].mxu1 %v750_v22 }
 0x222   :  { %v1034_v39 = vpop.f32.mrb[8].mxu0 }
 0x223   :  { %v1035_v36 = vpop.f32.mrb[9].mxu0 }
 0x224   :  { %v1036_v20 = vadd.f32 %v1035_v36, %v1034_v39 }
 0x226   :  { %v1078_v2 = vpop.f32.mrb[8].mxu1  ;;  %v890_v26 = vadd.f32 %v1036_v20, %v1001_v52 }
 0x227   :  { %v1079_v9 = vpop.f32.mrb[9].mxu1 }
 0x228   :  { %v1080_v5 = vadd.f32 %v1079_v9, %v1078_v2 }
 0x22a   :  { %v975_v61 = vadd.f32 %v1080_v5, %v890_v26 }
 0x22c   :  { %993 = vst [vmem:[%s2137_s5] sm:$0xff] %v975_v61  ;;  %v1037_v24 = vpop.f32.mrb[10].mxu0 }
 0x22d   :  { %v1038_v11 = vpop.f32.mrb[11].mxu0 }
 0x22e   :  { %v1039_v13 = vadd.f32 %v1038_v11, %v1037_v24 }
 0x22f   :  { %v1081_v63 = vpop.f32.mrb[10].mxu1 }
 0x230   :  { %v895_v31 = vadd.f32 %v1039_v13, %v1001_v52  ;;  %v1082_v58 = vpop.f32.mrb[11].mxu1 }
 0x231   :  { %v1083_v50 = vadd.f32 %v1082_v58, %v1081_v63 }
 0x233   :  { %v980_v56 = vadd.f32 %v1083_v50, %v895_v31 }
 0x235   :  { %994 = vst [vmem:[%s2137_s5 + $0x8] sm:$0xff] %v980_v56 }
 0x23f   :  { %v1040_v4 = vpop.f32.mrb[12].mxu0 }
 0x240   :  { %v1041_v16 = vpop.f32.mrb[13].mxu0 }
 0x241   :  { %v1042_v6 = vadd.f32 %v1041_v16, %v1040_v4 }
 0x243   :  { %v1084_v32 = vpop.f32.mrb[12].mxu1  ;;  %v900_v44 = vadd.f32 %v1042_v6, %v1001_v52 }
 0x244   :  { %v1085_v7 = vpop.f32.mrb[13].mxu1 }
 0x245   :  { %v1086_v17 = vadd.f32 %v1085_v7, %v1084_v32 }
 0x247   :  { %v985_v21 = vadd.f32 %v1086_v17, %v900_v44 }
 0x249   :  { %995 = vst [vmem:[%s2137_s5 + $0x10] sm:$0xff] %v985_v21 }
 0x24c   :  { %v1043_v0 = vpop.f32.mrb[14].mxu0 }
 0x24d   :  { %v1044_v57 = vpop.f32.mrb[15].mxu0 }
 0x24e   :  { %v1045_v62 = vadd.f32 %v1044_v57, %v1043_v0 }
 0x24f   :  { %v1087_v60 = vpop.f32.mrb[14].mxu1 }
 0x250   :  { %v1088_v18 = vpop.f32.mrb[15].mxu1  ;;  %v905_v41 = vadd.f32 %v1045_v62, %v1001_v52 }
 0x251   :  { %v1089_v1 = vadd.f32 %v1088_v18, %v1087_v60 }
 0x253   :  { %v990_v28 = vadd.f32 %v1089_v1, %v905_v41 }
 0x255   :  { %996 = vst [vmem:[%s2137_s5 + $0x18] sm:$0xff] %v990_v28 }

</bundles_post_ra>
